<compile_context>
chip_gen: v7x
topology: tpu7x:2x2x1
jax: 0.10.0
libtpu: 0.0.40
codegen_flags: <defaults>
</compile_context>

<pallas_src>
import functools
import math

import jax
import jax.numpy as jnp
from jax.experimental import pallas as pl
from jax.experimental.pallas import tpu as pltpu

_NEG_INF = -1e30


# --------------------------------------------------------------------------
# small helpers
# --------------------------------------------------------------------------
def _layernorm(v, w, b, eps=1e-5):
    mu = jnp.mean(v, axis=-1, keepdims=True)
    var = jnp.mean((v - mu) ** 2, axis=-1, keepdims=True)
    return (v - mu) * jax.lax.rsqrt(var + eps) * w + b


def _gelu_tanh(x):
    # PyTorch nn.GELU(approximate='tanh')
    c = 0.7978845608028654  # sqrt(2/pi)
    return 0.5 * x * (1.0 + jnp.tanh(c * (x + 0.044715 * x * x * x)))


def _vmem_limit_bytes():
    # ~3/4 of physical VMEM, capped at 100 MiB:
    #   v5e/v6e (128 MiB) -> 96 MiB, v7x (64 MiB) -> 48 MiB.
    default = 48 * 1024 * 1024
    try:
        cap = getattr(pltpu.get_tpu_info(), "vmem_capacity_bytes", None)
    except Exception:
        cap = None
    if not cap:
        return default
    return int(min(cap * 3 // 4, 100 * 1024 * 1024))


def _pick_seq_tile(T, C):
    # Tiling T requires the tile to respect the (8,128) constraint on (T, C)
    # blocks; keep TQ == TK == tile so the diagonal block is exactly one tile.
    if C % 128 == 0 and T > 256:
        for cand in (256, 128):
            if T % cand == 0:
                return cand
    return T


def _pick_hidden_chunk(hid):
    for cand in (1024, 512, 256):
        if hid % cand == 0 and cand < hid:
            return cand
    return hid


# --------------------------------------------------------------------------
# kernel 1: ln_1 + fused q/k/v projection, computed ONCE per token
# --------------------------------------------------------------------------
def make_qkv_kernel(scale):
    def qkv_kernel(x_ref, ln1w_ref, ln1b_ref,
                   wq_ref, bq_ref, wk_ref, bk_ref, wv_ref, bv_ref,
                   q_ref, k_ref, v_ref):
        x = x_ref[0].astype(jnp.float32)                              # (blk, C)
        h = _layernorm(x, ln1w_ref[0], ln1b_ref[0]).astype(jnp.bfloat16)
        q = jnp.dot(h, wq_ref[...], preferred_element_type=jnp.float32) + bq_ref[0]
        k = jnp.dot(h, wk_ref[...], preferred_element_type=jnp.float32) + bk_ref[0]
        v = jnp.dot(h, wv_ref[...], preferred_element_type=jnp.float32) + bv_ref[0]
        q_ref[0] = (q * scale).astype(q_ref.dtype)   # fold 1/sqrt(D) into q
        k_ref[0] = k.astype(k_ref.dtype)
        v_ref[0] = v.astype(v_ref.dtype)

    return qkv_kernel


# --------------------------------------------------------------------------
# kernel 2: flash-style causal attention (heads batched in-kernel)
# --------------------------------------------------------------------------
def make_flash_kernel(blk):
    def flash_kernel(q_ref, k_ref, v_ref, y_ref, m_sc, l_sc, acc_sc):
        qi = pl.program_id(1)
        ki = pl.program_id(2)

        @pl.when(ki == 0)
        def _init():
            m_sc[...] = jnp.full(m_sc.shape, -jnp.inf, m_sc.dtype)
            l_sc[...] = jnp.zeros(l_sc.shape, l_sc.dtype)
            acc_sc[...] = jnp.zeros(acc_sc.shape, acc_sc.dtype)

        def scores():
            # (H, TQ, D) x (H, TK, D) -> (H, TQ, TK), bf16 MXU, f32 accumulate
            return jnp.einsum("hqd,hkd->hqk", q_ref[0], k_ref[0],
                              preferred_element_type=jnp.float32)

        def online_update(s):
            m_prev = m_sc[...]
            m_new = jnp.maximum(m_prev, jnp.max(s, axis=-1, keepdims=True))
            alpha = jnp.exp(m_prev - m_new)
            p = jnp.exp(s - m_new)                       # single exp pass
            l_sc[...] = alpha * l_sc[...] + jnp.sum(p, axis=-1, keepdims=True)
            acc_sc[...] = alpha * acc_sc[...] + jnp.einsum(
                "hqk,hkd->hqd", p.astype(v_ref.dtype), v_ref[0],
                preferred_element_type=jnp.float32)
            m_sc[...] = m_new

        # strictly-below-diagonal K/V blocks: fully visible, no mask needed
        @pl.when(ki < qi)
        def _below_diag():
            online_update(scores())

        # diagonal block: apply the causal mask, then finalize this query tile
        @pl.when(ki == qi)
        def _diag_and_finalize():
            s = scores()
            row = jax.lax.broadcasted_iota(jnp.int32, (1, blk, blk), 1)
            col = jax.lax.broadcasted_iota(jnp.int32, (1, blk, blk), 2)
            online_update(jnp.where(col <= row, s, _NEG_INF))
            # normalize AFTER the PV matmul: divide the (H, TQ, D) accumulator,
            # not the (H, TQ, TK) probabilities.
            y_ref[0] = (acc_sc[...] *
                        pl.reciprocal(l_sc[...], approx=True)).astype(y_ref.dtype)
        # ki > qi: skipped entirely (causal block skipping); the K/V index_map
        # is clamped so no DMA is issued for those grid steps either.

    return flash_kernel


# --------------------------------------------------------------------------
# kernel 3: residual + ln_2 + chunked MLP + residual
# --------------------------------------------------------------------------
def make_mlp_kernel(n_chunks, unroll):
    def mlp_kernel(x_ref, y_ref, ln2w_ref, ln2b_ref,
                   wfc_ref, bfc_ref, wproj_ref, bproj_ref, o_ref):
        x1 = x_ref[0].astype(jnp.float32) + y_ref[0].astype(jnp.float32)
        blk, C = x1.shape
        h2 = _layernorm(x1, ln2w_ref[0], ln2b_ref[0]).astype(jnp.bfloat16)

        def body(i, acc):
            f = jnp.dot(h2, wfc_ref[i],
                        preferred_element_type=jnp.float32) + bfc_ref[i]
            f = _gelu_tanh(f)          # f32 elementwise (v5e-safe)
            return acc + jnp.dot(f.astype(jnp.bfloat16), wproj_ref[i],
                                 preferred_element_type=jnp.float32)

        mlp = jax.lax.fori_loop(0, n_chunks, body,
                                jnp.zeros((blk, C), jnp.float32),
                                unroll=unroll)
        o_ref[0] = (x1 + mlp + bproj_ref[0]).astype(o_ref.dtype)

    return mlp_kernel


# --------------------------------------------------------------------------
# wrapper
# --------------------------------------------------------------------------
def gpt_block_forward(x, params, n_head, *, seq_tile=None, hidden_chunk=None):
    B, T, C = x.shape
    H = n_head
    assert C % H == 0
    D = C // H
    hid = params["fc_w"].shape[1]

    blk = seq_tile if seq_tile is not None else _pick_seq_tile(T, C)
    assert T % blk == 0
    n_blk = T // blk
    chunk = hidden_chunk if hidden_chunk is not None else _pick_hidden_chunk(hid)
    assert hid % chunk == 0
    n_chunks = hid // chunk

    vmem_limit = _vmem_limit_bytes()
    bf16 = jnp.bfloat16

    # split c_attn into per-projection weights; matmul weights pre-cast to bf16
    wq = params["attn_w"][:, 0 * C:1 * C].astype(bf16)
    wk = params["attn_w"][:, 1 * C:2 * C].astype(bf16)
    wv = params["attn_w"][:, 2 * C:3 * C].astype(bf16)
    bq = params["attn_b"][:, 0 * C:1 * C]
    bk = params["attn_b"][:, 1 * C:2 * C]
    bv = params["attn_b"][:, 2 * C:3 * C]
    # MLP weights reshaped so the hidden chunk is a *leading* axis (only
    # leading-dim dynamic indexing inside the kernel).
    wfc = params["fc_w"].reshape(C, n_chunks, chunk).transpose(1, 0, 2).astype(bf16)
    bfc = params["fc_b"].reshape(n_chunks, 1, chunk)
    wproj = params["proj_w"].reshape(n_chunks, chunk, C).astype(bf16)

    def const(shape):
        return pl.BlockSpec(shape, lambda *idx: tuple(0 for _ in shape))

    # ---- 1) ln_1 + QKV projection: once per token (no per-query-tile redo) --
    q, k, v = pl.pallas_call(
        make_qkv_kernel(1.0 / math.sqrt(D)),
        out_shape=tuple(jax.ShapeDtypeStruct((B, T, C), bf16) for _ in range(3)),
        grid=(B, n_blk),
        in_specs=[
            pl.BlockSpec((1, blk, C), lambda b, i: (b, i, 0)),
            const((1, C)), const((1, C)),
            const((C, C)), const((1, C)),
            const((C, C)), const((1, C)),
            const((C, C)), const((1, C)),
        ],
        out_specs=tuple(pl.BlockSpec((1, blk, C), lambda b, i: (b, i, 0))
                        for _ in range(3)),
        compiler_params=pltpu.CompilerParams(
            dimension_semantics=("parallel", "parallel"),
            vmem_limit_bytes=vmem_limit),
    )(x, params["ln1_w"], params["ln1_b"], wq, bq, wk, bk, wv, bv)

    # head-split relayout is wrapper-level XLA (layout plumbing, not compute)
    def heads(t):  # (B, T, C) -> (B, H, T, D)
        return t.reshape(B, T, H, D).transpose(0, 2, 1, 3)

    q_h, k_h, v_h = heads(q), heads(k), heads(v)

    # ---- 2) flash attention over K/V tiles with causal block skipping -------
    kv_spec = pl.BlockSpec((1, H, blk, D),
                           lambda b, qi, ki: (b, 0, jnp.minimum(ki, qi), 0))
    y_h = pl.pallas_call(
        make_flash_kernel(blk),
        out_shape=jax.ShapeDtypeStruct((B, H, T, D), jnp.float32),
        grid=(B, n_blk, n_blk),
        in_specs=[
            pl.BlockSpec((1, H, blk, D), lambda b, qi, ki: (b, 0, qi, 0)),
            kv_spec,
            kv_spec,
        ],
        out_specs=pl.BlockSpec((1, H, blk, D), lambda b, qi, ki: (b, 0, qi, 0)),
        scratch_shapes=[
            pltpu.VMEM((H, blk, 1), jnp.float32),   # running max m
            pltpu.VMEM((H, blk, 1), jnp.float32),   # running denom l
            pltpu.VMEM((H, blk, D), jnp.float32),   # running PV accumulator
        ],
        compiler_params=pltpu.CompilerParams(
            dimension_semantics=("parallel", "parallel", "arbitrary"),
            vmem_limit_bytes=vmem_limit),
    )(q_h, k_h, v_h)

    # back to a lane-dense (B, T, C) slab for the residual / MLP kernel
    y = y_h.transpose(0, 2, 1, 3).reshape(B, T, C)
    # NOTE: the reference attention never applies c_proj -- reproduced.

    # ---- 3) residual + ln_2 + chunked MLP + residual -------------------------
    out = pl.pallas_call(
        make_mlp_kernel(n_chunks, unroll=n_chunks <= 4),
        out_shape=jax.ShapeDtypeStruct((B, T, C), x.dtype),
        grid=(B, n_blk),
        in_specs=[
            pl.BlockSpec((1, blk, C), lambda b, i: (b, i, 0)),   # x (residual)
            pl.BlockSpec((1, blk, C), lambda b, i: (b, i, 0)),   # attn output
            const((1, C)), const((1, C)),                        # ln2 w, b
            const((n_chunks, C, chunk)), const((n_chunks, 1, chunk)),
            const((n_chunks, chunk, C)), const((1, C)),
        ],
        out_specs=pl.BlockSpec((1, blk, C), lambda b, i: (b, i, 0)),
        compiler_params=pltpu.CompilerParams(
            dimension_semantics=("parallel", "parallel"),
            vmem_limit_bytes=vmem_limit),
    )(x, y, params["ln2_w"], params["ln2_b"], wfc, bfc, wproj, params["proj_b"])
    return out


# --------------------------------------------------------------------------
# parameters + pure-JAX reference (for correctness checking)
# --------------------------------------------------------------------------
def init_params(key, n_embd):
    C = n_embd
    ks = jax.random.split(key, 6)
    std = 0.02
    return {
        "ln1_w": jnp.ones((1, C), jnp.float32),
        "ln1_b": jnp.zeros((1, C), jnp.float32),
        "attn_w": jax.random.normal(ks[0], (C, 3 * C), jnp.float32) * std,
        "attn_b": jax.random.normal(ks[1], (1, 3 * C), jnp.float32) * std,
        "ln2_w": jnp.ones((1, C), jnp.float32),
        "ln2_b": jnp.zeros((1, C), jnp.float32),
        "fc_w": jax.random.normal(ks[2], (C, 4 * C), jnp.float32) * std,
        "fc_b": jax.random.normal(ks[3], (1, 4 * C), jnp.float32) * std,
        "proj_w": jax.random.normal(ks[4], (4 * C, C), jnp.float32) * std,
        "proj_b": jax.random.normal(ks[5], (1, C), jnp.float32) * std,
    }


def block_reference(x, params, n_head):
    B, T, C = x.shape
    H, D = n_head, C // n_head
    h = _layernorm(x, params["ln1_w"][0], params["ln1_b"][0])
    qkv = h @ params["attn_w"] + params["attn_b"][0]
    q, k, v = jnp.split(qkv, 3, axis=-1)
    q = q.reshape(B, T, H, D).transpose(0, 2, 1, 3)
    k = k.reshape(B, T, H, D).transpose(0, 2, 1, 3)
    v = v.reshape(B, T, H, D).transpose(0, 2, 1, 3)
    s = jnp.einsum("bhqd,bhkd->bhqk", q, k) / math.sqrt(D)
    mask = jnp.tril(jnp.ones((T, T), bool))
    s = jnp.where(mask, s, -jnp.inf)
    p = jax.nn.softmax(s, axis=-1)
    y = jnp.einsum("bhqk,bhkd->bhqd", p, v).transpose(0, 2, 1, 3).reshape(B, T, C)
    x1 = x + y                                       # (no c_proj, as in spec)
    h2 = _layernorm(x1, params["ln2_w"][0], params["ln2_b"][0])
    f = _gelu_tanh(h2 @ params["fc_w"] + params["fc_b"][0])
    return x1 + f @ params["proj_w"] + params["proj_b"][0]


# --------------------------------------------------------------------------
if __name__ == "__main__":
    def run_case(B, T, C, H, key):
        kx, kp = jax.random.split(key)
        x = jax.random.normal(kx, (B, T, C), jnp.float32)
        params = init_params(kp, C)
        fwd = jax.jit(functools.partial(gpt_block_forward, n_head=H))
        out = jax.block_until_ready(fwd(x, params))
        assert out.shape == (B, T, C)
        assert bool(jnp.all(jnp.isfinite(out)))
        ref = block_reference(x, params, H)
        err = float(jnp.max(jnp.abs(out - ref)))
        assert err < 5e-2, f"max abs err vs reference = {err}"

    key = jax.random.PRNGKey(0)
    k1, k2 = jax.random.split(key)
    # small GPTConfig-consistent shapes: n_embd=32, n_head=4, seq T=8, batch B=2
    run_case(2, 8, 32, 4, k1)
    # larger case exercising flash K/V streaming, causal block skipping and the
    # chunked-MLP fori_loop (2 q/k tiles of 256, 2 hidden chunks of 512)
    run_case(1, 512, 256, 4, k2)
    print("KERNEL_OK")
</pallas_src>

<mosaic_0001>
module attributes {stable_mosaic.version = 11 : i64} {
  func.func @qkv_kernel(%arg0: i32, %arg1: i32, %arg2: memref<1x8x32xf32, #tpu.memory_space<vmem>>, %arg3: memref<1x32xf32, #tpu.memory_space<vmem>>, %arg4: memref<1x32xf32, #tpu.memory_space<vmem>>, %arg5: memref<32x32xbf16, #tpu.memory_space<vmem>>, %arg6: memref<1x32xf32, #tpu.memory_space<vmem>>, %arg7: memref<32x32xbf16, #tpu.memory_space<vmem>>, %arg8: memref<1x32xf32, #tpu.memory_space<vmem>>, %arg9: memref<32x32xbf16, #tpu.memory_space<vmem>>, %arg10: memref<1x32xf32, #tpu.memory_space<vmem>>, %arg11: memref<1x8x32xbf16, #tpu.memory_space<vmem>>, %arg12: memref<1x8x32xbf16, #tpu.memory_space<vmem>>, %arg13: memref<1x8x32xbf16, #tpu.memory_space<vmem>>) attributes {dimension_semantics = [#tpu.dimension_semantics<parallel>, #tpu.dimension_semantics<parallel>], iteration_bounds = array<i64: 2, 1>, scalar_prefetch = 0 : i64, scratch_operands = 0 : i64, tpu.core_type = #tpu.core_type<tc>, window_params = [{transform_indices = @transform_0, window_bounds = array<i64: 1, 8, 32>}, {pipeline_mode = #tpu.pipeline_mode<synchronous>, transform_indices = @transform_1, window_bounds = array<i64: 1, 32>}, {pipeline_mode = #tpu.pipeline_mode<synchronous>, transform_indices = @transform_2, window_bounds = array<i64: 1, 32>}, {pipeline_mode = #tpu.pipeline_mode<synchronous>, transform_indices = @transform_3, window_bounds = array<i64: 32, 32>}, {pipeline_mode = #tpu.pipeline_mode<synchronous>, transform_indices = @transform_4, window_bounds = array<i64: 1, 32>}, {pipeline_mode = #tpu.pipeline_mode<synchronous>, transform_indices = @transform_5, window_bounds = array<i64: 32, 32>}, {pipeline_mode = #tpu.pipeline_mode<synchronous>, transform_indices = @transform_6, window_bounds = array<i64: 1, 32>}, {pipeline_mode = #tpu.pipeline_mode<synchronous>, transform_indices = @transform_7, window_bounds = array<i64: 32, 32>}, {pipeline_mode = #tpu.pipeline_mode<synchronous>, transform_indices = @transform_8, window_bounds = array<i64: 1, 32>}, {transform_indices = @transform_9, window_bounds = array<i64: 1, 8, 32>}, {transform_indices = @transform_10, window_bounds = array<i64: 1, 8, 32>}, {transform_indices = @transform_11, window_bounds = array<i64: 1, 8, 32>}]} {
    %c0 = arith.constant 0 : index
    %c0_0 = arith.constant 0 : index
    %c0_1 = arith.constant 0 : index
    %0 = vector.load %arg2[%c0, %c0_0, %c0_1] : memref<1x8x32xf32, #tpu.memory_space<vmem>>, vector<1x8x32xf32>
    %1 = vector.shape_cast %0 : vector<1x8x32xf32> to vector<8x32xf32>
    %c0_2 = arith.constant 0 : index
    %c0_3 = arith.constant 0 : index
    %2 = vector.load %arg3[%c0_2, %c0_3] : memref<1x32xf32, #tpu.memory_space<vmem>>, vector<1x32xf32>
    %3 = vector.shape_cast %2 : vector<1x32xf32> to vector<32xf32>
    %c0_4 = arith.constant 0 : index
    %c0_5 = arith.constant 0 : index
    %4 = vector.load %arg4[%c0_4, %c0_5] : memref<1x32xf32, #tpu.memory_space<vmem>>, vector<1x32xf32>
    %5 = vector.shape_cast %4 : vector<1x32xf32> to vector<32xf32>
    %cst = arith.constant dense<0.000000e+00> : vector<8xf32>
    %6 = vector.multi_reduction <add>, %1, %cst [1] : vector<8x32xf32> to vector<8xf32>
    %7 = vector.shape_cast %6 : vector<8xf32> to vector<8x1xf32>
    %cst_6 = arith.constant 3.200000e+01 : f32
    %8 = vector.broadcast %cst_6 : f32 to vector<8x1xf32>
    %9 = arith.divf %7, %8 : vector<8x1xf32>
    %10 = vector.broadcast %9 : vector<8x1xf32> to vector<8x32xf32>
    %11 = arith.subf %1, %10 : vector<8x32xf32>
    %12 = arith.mulf %11, %11 : vector<8x32xf32>
    %cst_7 = arith.constant dense<0.000000e+00> : vector<8xf32>
    %13 = vector.multi_reduction <add>, %12, %cst_7 [1] : vector<8x32xf32> to vector<8xf32>
    %14 = vector.shape_cast %13 : vector<8xf32> to vector<8x1xf32>
    %cst_8 = arith.constant 3.200000e+01 : f32
    %15 = vector.broadcast %cst_8 : f32 to vector<8x1xf32>
    %16 = arith.divf %14, %15 : vector<8x1xf32>
    %17 = vector.broadcast %9 : vector<8x1xf32> to vector<8x32xf32>
    %18 = arith.subf %1, %17 : vector<8x32xf32>
    %cst_9 = arith.constant 9.99999974E-6 : f32
    %19 = vector.broadcast %cst_9 : f32 to vector<8x1xf32>
    %20 = arith.addf %16, %19 : vector<8x1xf32>
    %21 = math.rsqrt %20 : vector<8x1xf32>
    %22 = vector.broadcast %21 : vector<8x1xf32> to vector<8x32xf32>
    %23 = arith.mulf %18, %22 : vector<8x32xf32>
    %24 = vector.shape_cast %3 : vector<32xf32> to vector<1x32xf32>
    %25 = vector.broadcast %24 : vector<1x32xf32> to vector<8x32xf32>
    %26 = arith.mulf %23, %25 : vector<8x32xf32>
    %27 = vector.shape_cast %5 : vector<32xf32> to vector<1x32xf32>
    %28 = vector.broadcast %27 : vector<1x32xf32> to vector<8x32xf32>
    %29 = arith.addf %26, %28 : vector<8x32xf32>
    %30 = arith.truncf %29 : vector<8x32xf32> to vector<8x32xbf16>
    %c0_10 = arith.constant 0 : index
    %c0_11 = arith.constant 0 : index
    %31 = vector.load %arg5[%c0_10, %c0_11] : memref<32x32xbf16, #tpu.memory_space<vmem>>, vector<32x32xbf16>
    %cst_12 = arith.constant dense<0.000000e+00> : vector<8x32xf32>
    %32 = tpu.matmul %30, %31, %cst_12 {dimension_numbers = #tpu.dot_dimension_numbers<[1], [0], [0], [1], [0, 0, 1, 1], [], []>} : vector<8x32xbf16>, vector<32x32xbf16>, vector<8x32xf32> -> vector<8x32xf32>
    %c0_13 = arith.constant 0 : index
    %c0_14 = arith.constant 0 : index
    %33 = vector.load %arg6[%c0_13, %c0_14] : memref<1x32xf32, #tpu.memory_space<vmem>>, vector<1x32xf32>
    %34 = vector.shape_cast %33 : vector<1x32xf32> to vector<32xf32>
    %35 = vector.shape_cast %34 : vector<32xf32> to vector<1x32xf32>
    %36 = vector.broadcast %35 : vector<1x32xf32> to vector<8x32xf32>
    %37 = arith.addf %32, %36 : vector<8x32xf32>
    %c0_15 = arith.constant 0 : index
    %c0_16 = arith.constant 0 : index
    %38 = vector.load %arg7[%c0_15, %c0_16] : memref<32x32xbf16, #tpu.memory_space<vmem>>, vector<32x32xbf16>
    %cst_17 = arith.constant dense<0.000000e+00> : vector<8x32xf32>
    %39 = tpu.matmul %30, %38, %cst_17 {dimension_numbers = #tpu.dot_dimension_numbers<[1], [0], [0], [1], [0, 0, 1, 1], [], []>} : vector<8x32xbf16>, vector<32x32xbf16>, vector<8x32xf32> -> vector<8x32xf32>
    %c0_18 = arith.constant 0 : index
    %c0_19 = arith.constant 0 : index
    %40 = vector.load %arg8[%c0_18, %c0_19] : memref<1x32xf32, #tpu.memory_space<vmem>>, vector<1x32xf32>
    %41 = vector.shape_cast %40 : vector<1x32xf32> to vector<32xf32>
    %42 = vector.shape_cast %41 : vector<32xf32> to vector<1x32xf32>
    %43 = vector.broadcast %42 : vector<1x32xf32> to vector<8x32xf32>
    %44 = arith.addf %39, %43 : vector<8x32xf32>
    %c0_20 = arith.constant 0 : index
    %c0_21 = arith.constant 0 : index
    %45 = vector.load %arg9[%c0_20, %c0_21] : memref<32x32xbf16, #tpu.memory_space<vmem>>, vector<32x32xbf16>
    %cst_22 = arith.constant dense<0.000000e+00> : vector<8x32xf32>
    %46 = tpu.matmul %30, %45, %cst_22 {dimension_numbers = #tpu.dot_dimension_numbers<[1], [0], [0], [1], [0, 0, 1, 1], [], []>} : vector<8x32xbf16>, vector<32x32xbf16>, vector<8x32xf32> -> vector<8x32xf32>
    %c0_23 = arith.constant 0 : index
    %c0_24 = arith.constant 0 : index
    %47 = vector.load %arg10[%c0_23, %c0_24] : memref<1x32xf32, #tpu.memory_space<vmem>>, vector<1x32xf32>
    %48 = vector.shape_cast %47 : vector<1x32xf32> to vector<32xf32>
    %49 = vector.shape_cast %48 : vector<32xf32> to vector<1x32xf32>
    %50 = vector.broadcast %49 : vector<1x32xf32> to vector<8x32xf32>
    %51 = arith.addf %46, %50 : vector<8x32xf32>
    %cst_25 = arith.constant 0.353553385 : f32
    %52 = vector.broadcast %cst_25 : f32 to vector<8x32xf32>
    %53 = arith.mulf %37, %52 : vector<8x32xf32>
    %54 = arith.truncf %53 : vector<8x32xf32> to vector<8x32xbf16>
    %c0_26 = arith.constant 0 : index
    %c0_27 = arith.constant 0 : index
    %c0_28 = arith.constant 0 : index
    %55 = vector.load %arg11[%c0_26, %c0_27, %c0_28] : memref<1x8x32xbf16, #tpu.memory_space<vmem>>, vector<1x8x32xbf16>
    %56 = vector.shape_cast %55 : vector<1x8x32xbf16> to vector<8x32xbf16>
    %57 = vector.shape_cast %54 : vector<8x32xbf16> to vector<1x8x32xbf16>
    tpu.vector_store %arg11[%c0_26, %c0_27, %c0_28], %57 {strides = array<i32>} : memref<1x8x32xbf16, #tpu.memory_space<vmem>>, vector<1x8x32xbf16>,
    %58 = arith.truncf %44 : vector<8x32xf32> to vector<8x32xbf16>
    %c0_29 = arith.constant 0 : index
    %c0_30 = arith.constant 0 : index
    %c0_31 = arith.constant 0 : index
    %59 = vector.load %arg12[%c0_29, %c0_30, %c0_31] : memref<1x8x32xbf16, #tpu.memory_space<vmem>>, vector<1x8x32xbf16>
    %60 = vector.shape_cast %59 : vector<1x8x32xbf16> to vector<8x32xbf16>
    %61 = vector.shape_cast %58 : vector<8x32xbf16> to vector<1x8x32xbf16>
    tpu.vector_store %arg12[%c0_29, %c0_30, %c0_31], %61 {strides = array<i32>} : memref<1x8x32xbf16, #tpu.memory_space<vmem>>, vector<1x8x32xbf16>,
    %62 = arith.truncf %51 : vector<8x32xf32> to vector<8x32xbf16>
    %c0_32 = arith.constant 0 : index
    %c0_33 = arith.constant 0 : index
    %c0_34 = arith.constant 0 : index
    %63 = vector.load %arg13[%c0_32, %c0_33, %c0_34] : memref<1x8x32xbf16, #tpu.memory_space<vmem>>, vector<1x8x32xbf16>
    %64 = vector.shape_cast %63 : vector<1x8x32xbf16> to vector<8x32xbf16>
    %65 = vector.shape_cast %62 : vector<8x32xbf16> to vector<1x8x32xbf16>
    tpu.vector_store %arg13[%c0_32, %c0_33, %c0_34], %65 {strides = array<i32>} : memref<1x8x32xbf16, #tpu.memory_space<vmem>>, vector<1x8x32xbf16>,
    return
  }
  func.func @transform_0(%arg0: i32, %arg1: i32) -> (i32, i32, i32) {
    %c0_i32 = arith.constant 0 : i32
    %c0_i32_0 = arith.constant 0 : i32
    return %arg0, %arg1, %c0_i32 : i32, i32, i32
  }
  func.func @transform_1(%arg0: i32, %arg1: i32) -> (i32, i32) {
    %c0_i32 = arith.constant 0 : i32
    %c0_i32_0 = arith.constant 0 : i32
    %c0_i32_1 = arith.constant 0 : i32
    return %c0_i32, %c0_i32_0 : i32, i32
  }
  func.func @transform_2(%arg0: i32, %arg1: i32) -> (i32, i32) {
    %c0_i32 = arith.constant 0 : i32
    %c0_i32_0 = arith.constant 0 : i32
    %c0_i32_1 = arith.constant 0 : i32
    return %c0_i32, %c0_i32_0 : i32, i32
  }
  func.func @transform_3(%arg0: i32, %arg1: i32) -> (i32, i32) {
    %c0_i32 = arith.constant 0 : i32
    %c0_i32_0 = arith.constant 0 : i32
    %c0_i32_1 = arith.constant 0 : i32
    return %c0_i32, %c0_i32_0 : i32, i32
  }
  func.func @transform_4(%arg0: i32, %arg1: i32) -> (i32, i32) {
    %c0_i32 = arith.constant 0 : i32
    %c0_i32_0 = arith.constant 0 : i32
    %c0_i32_1 = arith.constant 0 : i32
    return %c0_i32, %c0_i32_0 : i32, i32
  }
  func.func @transform_5(%arg0: i32, %arg1: i32) -> (i32, i32) {
    %c0_i32 = arith.constant 0 : i32
    %c0_i32_0 = arith.constant 0 : i32
    %c0_i32_1 = arith.constant 0 : i32
    return %c0_i32, %c0_i32_0 : i32, i32
  }
  func.func @transform_6(%arg0: i32, %arg1: i32) -> (i32, i32) {
    %c0_i32 = arith.constant 0 : i32
    %c0_i32_0 = arith.constant 0 : i32
    %c0_i32_1 = arith.constant 0 : i32
    return %c0_i32, %c0_i32_0 : i32, i32
  }
  func.func @transform_7(%arg0: i32, %arg1: i32) -> (i32, i32) {
    %c0_i32 = arith.constant 0 : i32
    %c0_i32_0 = arith.constant 0 : i32
    %c0_i32_1 = arith.constant 0 : i32
    return %c0_i32, %c0_i32_0 : i32, i32
  }
  func.func @transform_8(%arg0: i32, %arg1: i32) -> (i32, i32) {
    %c0_i32 = arith.constant 0 : i32
    %c0_i32_0 = arith.constant 0 : i32
    %c0_i32_1 = arith.constant 0 : i32
    return %c0_i32, %c0_i32_0 : i32, i32
  }
  func.func @transform_9(%arg0: i32, %arg1: i32) -> (i32, i32, i32) {
    %c0_i32 = arith.constant 0 : i32
    %c0_i32_0 = arith.constant 0 : i32
    return %arg0, %arg1, %c0_i32 : i32, i32, i32
  }
  func.func @transform_10(%arg0: i32, %arg1: i32) -> (i32, i32, i32) {
    %c0_i32 = arith.constant 0 : i32
    %c0_i32_0 = arith.constant 0 : i32
    return %arg0, %arg1, %c0_i32 : i32, i32, i32
  }
  func.func @transform_11(%arg0: i32, %arg1: i32) -> (i32, i32, i32) {
    %c0_i32 = arith.constant 0 : i32
    %c0_i32_0 = arith.constant 0 : i32
    return %arg0, %arg1, %c0_i32 : i32, i32, i32
  }
}

module attributes {stable_mosaic.version = 11 : i64} {
  func.func @flash_kernel(%arg0: i32, %arg1: i32, %arg2: i32, %arg3: memref<1x4x8x8xbf16, #tpu.memory_space<vmem>>, %arg4: memref<1x4x8x8xbf16, #tpu.memory_space<vmem>>, %arg5: memref<1x4x8x8xbf16, #tpu.memory_space<vmem>>, %arg6: memref<1x4x8x8xf32, #tpu.memory_space<vmem>>, %arg7: memref<4x8x1xf32, #tpu.memory_space<vmem>>, %arg8: memref<4x8x1xf32, #tpu.memory_space<vmem>>, %arg9: memref<4x8x8xf32, #tpu.memory_space<vmem>>) attributes {dimension_semantics = [#tpu.dimension_semantics<parallel>, #tpu.dimension_semantics<parallel>, #tpu.dimension_semantics<arbitrary>], iteration_bounds = array<i64: 2, 1, 1>, scalar_prefetch = 0 : i64, scratch_operands = 3 : i64, tpu.core_type = #tpu.core_type<tc>, window_params = [{transform_indices = @transform_0, window_bounds = array<i64: 1, 4, 8, 8>}, {transform_indices = @transform_1, window_bounds = array<i64: 1, 4, 8, 8>}, {transform_indices = @transform_2, window_bounds = array<i64: 1, 4, 8, 8>}, {transform_indices = @transform_3, window_bounds = array<i64: 1, 4, 8, 8>}]} {
    %c0_i32 = arith.constant 0 : i32
    %0 = arith.cmpi eq, %arg2, %c0_i32 : i32
    %1 = arith.extui %0 : i1 to i32
    %c0_i32_0 = arith.constant 0 : i32
    %2 = arith.cmpi ne, %1, %c0_i32_0 : i32
    scf.if %2 {
      %cst = arith.constant 0xFF800000 : f32
      %9 = vector.broadcast %cst : f32 to vector<4x8x1xf32>
      %c0 = arith.constant 0 : index
      %c0_3 = arith.constant 0 : index
      %c0_4 = arith.constant 0 : index
      %10 = vector.load %arg7[%c0, %c0_3, %c0_4] : memref<4x8x1xf32, #tpu.memory_space<vmem>>, vector<4x8x1xf32>
      tpu.vector_store %arg7[%c0, %c0_3, %c0_4], %9 {strides = array<i32>} : memref<4x8x1xf32, #tpu.memory_space<vmem>>, vector<4x8x1xf32>,
      %cst_5 = arith.constant 0.000000e+00 : f32
      %11 = vector.broadcast %cst_5 : f32 to vector<4x8x1xf32>
      %c0_6 = arith.constant 0 : index
      %c0_7 = arith.constant 0 : index
      %c0_8 = arith.constant 0 : index
      %12 = vector.load %arg8[%c0_6, %c0_7, %c0_8] : memref<4x8x1xf32, #tpu.memory_space<vmem>>, vector<4x8x1xf32>
      tpu.vector_store %arg8[%c0_6, %c0_7, %c0_8], %11 {strides = array<i32>} : memref<4x8x1xf32, #tpu.memory_space<vmem>>, vector<4x8x1xf32>,
      %cst_9 = arith.constant 0.000000e+00 : f32
      %13 = vector.broadcast %cst_9 : f32 to vector<4x8x8xf32>
      %c0_10 = arith.constant 0 : index
      %c0_11 = arith.constant 0 : index
      %c0_12 = arith.constant 0 : index
      %14 = vector.load %arg9[%c0_10, %c0_11, %c0_12] : memref<4x8x8xf32, #tpu.memory_space<vmem>>, vector<4x8x8xf32>
      tpu.vector_store %arg9[%c0_10, %c0_11, %c0_12], %13 {strides = array<i32>} : memref<4x8x8xf32, #tpu.memory_space<vmem>>, vector<4x8x8xf32>,
    } else {
    }
    %3 = arith.cmpi slt, %arg2, %arg1 : i32
    %4 = arith.extui %3 : i1 to i32
    %c0_i32_1 = arith.constant 0 : i32
    %5 = arith.cmpi ne, %4, %c0_i32_1 : i32
    scf.if %5 {
      %c0 = arith.constant 0 : index
      %c0_3 = arith.constant 0 : index
      %c0_4 = arith.constant 0 : index
      %c0_5 = arith.constant 0 : index
      %9 = vector.load %arg3[%c0, %c0_3, %c0_4, %c0_5] : memref<1x4x8x8xbf16, #tpu.memory_space<vmem>>, vector<1x4x8x8xbf16>
      %10 = vector.shape_cast %9 : vector<1x4x8x8xbf16> to vector<4x8x8xbf16>
      %c0_6 = arith.constant 0 : index
      %c0_7 = arith.constant 0 : index
      %c0_8 = arith.constant 0 : index
      %c0_9 = arith.constant 0 : index
      %11 = vector.load %arg4[%c0_6, %c0_7, %c0_8, %c0_9] : memref<1x4x8x8xbf16, #tpu.memory_space<vmem>>, vector<1x4x8x8xbf16>
      %12 = vector.shape_cast %11 : vector<1x4x8x8xbf16> to vector<4x8x8xbf16>
      "tpu.trace_start"() <{level = 10 : i32, message = "hqd,hkd->hqk"}> : () -> ()
      %cst = arith.constant dense<0.000000e+00> : vector<4x8x8xf32>
      %13 = tpu.matmul %10, %12, %cst {dimension_numbers = #tpu.dot_dimension_numbers<[2], [2], [1], [1], [0, 0, 0, 1, 1, 1], [0], [0]>} : vector<4x8x8xbf16>, vector<4x8x8xbf16>, vector<4x8x8xf32> -> vector<4x8x8xf32>
      "tpu.trace_stop"() : () -> ()
      %c0_10 = arith.constant 0 : index
      %c0_11 = arith.constant 0 : index
      %c0_12 = arith.constant 0 : index
      %14 = vector.load %arg7[%c0_10, %c0_11, %c0_12] : memref<4x8x1xf32, #tpu.memory_space<vmem>>, vector<4x8x1xf32>
      %cst_13 = arith.constant dense<0xFF800000> : vector<4x8xf32>
      %15 = vector.multi_reduction <maximumf>, %13, %cst_13 [2] : vector<4x8x8xf32> to vector<4x8xf32>
      %16 = vector.shape_cast %15 : vector<4x8xf32> to vector<4x8x1xf32>
      %17 = arith.maximumf %14, %16 : vector<4x8x1xf32>
      %18 = arith.subf %14, %17 : vector<4x8x1xf32>
      %19 = math.exp %18 : vector<4x8x1xf32>
      %20 = vector.broadcast %17 : vector<4x8x1xf32> to vector<4x8x8xf32>
      %21 = arith.subf %13, %20 : vector<4x8x8xf32>
      %22 = math.exp %21 : vector<4x8x8xf32>
      %c0_14 = arith.constant 0 : index
      %c0_15 = arith.constant 0 : index
      %c0_16 = arith.constant 0 : index
      %23 = vector.load %arg8[%c0_14, %c0_15, %c0_16] : memref<4x8x1xf32, #tpu.memory_space<vmem>>, vector<4x8x1xf32>
      %24 = arith.mulf %19, %23 : vector<4x8x1xf32>
      %cst_17 = arith.constant dense<0.000000e+00> : vector<4x8xf32>
      %25 = vector.multi_reduction <add>, %22, %cst_17 [2] : vector<4x8x8xf32> to vector<4x8xf32>
      %26 = vector.shape_cast %25 : vector<4x8xf32> to vector<4x8x1xf32>
      %27 = arith.addf %24, %26 : vector<4x8x1xf32>
      %c0_18 = arith.constant 0 : index
      %c0_19 = arith.constant 0 : index
      %c0_20 = arith.constant 0 : index
      %28 = vector.load %arg8[%c0_18, %c0_19, %c0_20] : memref<4x8x1xf32, #tpu.memory_space<vmem>>, vector<4x8x1xf32>
      tpu.vector_store %arg8[%c0_18, %c0_19, %c0_20], %27 {strides = array<i32>} : memref<4x8x1xf32, #tpu.memory_space<vmem>>, vector<4x8x1xf32>,
      %c0_21 = arith.constant 0 : index
      %c0_22 = arith.constant 0 : index
      %c0_23 = arith.constant 0 : index
      %29 = vector.load %arg9[%c0_21, %c0_22, %c0_23] : memref<4x8x8xf32, #tpu.memory_space<vmem>>, vector<4x8x8xf32>
      %30 = vector.broadcast %19 : vector<4x8x1xf32> to vector<4x8x8xf32>
      %31 = arith.mulf %30, %29 : vector<4x8x8xf32>
      %32 = arith.truncf %22 : vector<4x8x8xf32> to vector<4x8x8xbf16>
      %c0_24 = arith.constant 0 : index
      %c0_25 = arith.constant 0 : index
      %c0_26 = arith.constant 0 : index
      %c0_27 = arith.constant 0 : index
      %33 = vector.load %arg5[%c0_24, %c0_25, %c0_26, %c0_27] : memref<1x4x8x8xbf16, #tpu.memory_space<vmem>>, vector<1x4x8x8xbf16>
      %34 = vector.shape_cast %33 : vector<1x4x8x8xbf16> to vector<4x8x8xbf16>
      "tpu.trace_start"() <{level = 10 : i32, message = "hqk,hkd->hqd"}> : () -> ()
      %cst_28 = arith.constant dense<0.000000e+00> : vector<4x8x8xf32>
      %35 = tpu.matmul %32, %34, %cst_28 {dimension_numbers = #tpu.dot_dimension_numbers<[2], [1], [1], [2], [0, 0, 0, 1, 1, 2], [0], [0]>} : vector<4x8x8xbf16>, vector<4x8x8xbf16>, vector<4x8x8xf32> -> vector<4x8x8xf32>
      "tpu.trace_stop"() : () -> ()
      %36 = arith.addf %31, %35 : vector<4x8x8xf32>
      %c0_29 = arith.constant 0 : index
      %c0_30 = arith.constant 0 : index
      %c0_31 = arith.constant 0 : index
      %37 = vector.load %arg9[%c0_29, %c0_30, %c0_31] : memref<4x8x8xf32, #tpu.memory_space<vmem>>, vector<4x8x8xf32>
      tpu.vector_store %arg9[%c0_29, %c0_30, %c0_31], %36 {strides = array<i32>} : memref<4x8x8xf32, #tpu.memory_space<vmem>>, vector<4x8x8xf32>,
      %c0_32 = arith.constant 0 : index
      %c0_33 = arith.constant 0 : index
      %c0_34 = arith.constant 0 : index
      %38 = vector.load %arg7[%c0_32, %c0_33, %c0_34] : memref<4x8x1xf32, #tpu.memory_space<vmem>>, vector<4x8x1xf32>
      tpu.vector_store %arg7[%c0_32, %c0_33, %c0_34], %17 {strides = array<i32>} : memref<4x8x1xf32, #tpu.memory_space<vmem>>, vector<4x8x1xf32>,
    } else {
    }
    %6 = arith.cmpi eq, %arg2, %arg1 : i32
    %7 = arith.extui %6 : i1 to i32
    %c0_i32_2 = arith.constant 0 : i32
    %8 = arith.cmpi ne, %7, %c0_i32_2 : i32
    scf.if %8 {
      %c0 = arith.constant 0 : index
      %c0_3 = arith.constant 0 : index
      %c0_4 = arith.constant 0 : index
      %c0_5 = arith.constant 0 : index
      %9 = vector.load %arg3[%c0, %c0_3, %c0_4, %c0_5] : memref<1x4x8x8xbf16, #tpu.memory_space<vmem>>, vector<1x4x8x8xbf16>
      %10 = vector.shape_cast %9 : vector<1x4x8x8xbf16> to vector<4x8x8xbf16>
      %c0_6 = arith.constant 0 : index
      %c0_7 = arith.constant 0 : index
      %c0_8 = arith.constant 0 : index
      %c0_9 = arith.constant 0 : index
      %11 = vector.load %arg4[%c0_6, %c0_7, %c0_8, %c0_9] : memref<1x4x8x8xbf16, #tpu.memory_space<vmem>>, vector<1x4x8x8xbf16>
      %12 = vector.shape_cast %11 : vector<1x4x8x8xbf16> to vector<4x8x8xbf16>
      "tpu.trace_start"() <{level = 10 : i32, message = "hqd,hkd->hqk"}> : () -> ()
      %cst = arith.constant dense<0.000000e+00> : vector<4x8x8xf32>
      %13 = tpu.matmul %10, %12, %cst {dimension_numbers = #tpu.dot_dimension_numbers<[2], [2], [1], [1], [0, 0, 0, 1, 1, 1], [0], [0]>} : vector<4x8x8xbf16>, vector<4x8x8xbf16>, vector<4x8x8xf32> -> vector<4x8x8xf32>
      "tpu.trace_stop"() : () -> ()
      %14 = tpu.iota {dimensions = array<i32: 1>} : vector<1x8x8xi32>
      %15 = tpu.iota {dimensions = array<i32: 2>} : vector<1x8x8xi32>
      %16 = arith.cmpi sle, %15, %14 : vector<1x8x8xi32>
      %cst_10 = arith.constant -1.000000e+30 : f32
      %17 = vector.shape_cast %16 : vector<1x8x8xi1> to vector<1x8x8xi1>
      %18 = vector.broadcast %17 : vector<1x8x8xi1> to vector<4x8x8xi1>
      %19 = vector.broadcast %cst_10 : f32 to vector<4x8x8xf32>
      %20 = arith.select %18, %13, %19 : vector<4x8x8xi1>, vector<4x8x8xf32>
      %c0_11 = arith.constant 0 : index
      %c0_12 = arith.constant 0 : index
      %c0_13 = arith.constant 0 : index
      %21 = vector.load %arg7[%c0_11, %c0_12, %c0_13] : memref<4x8x1xf32, #tpu.memory_space<vmem>>, vector<4x8x1xf32>
      %cst_14 = arith.constant dense<0xFF800000> : vector<4x8xf32>
      %22 = vector.multi_reduction <maximumf>, %20, %cst_14 [2] : vector<4x8x8xf32> to vector<4x8xf32>
      %23 = vector.shape_cast %22 : vector<4x8xf32> to vector<4x8x1xf32>
      %24 = arith.maximumf %21, %23 : vector<4x8x1xf32>
      %25 = arith.subf %21, %24 : vector<4x8x1xf32>
      %26 = math.exp %25 : vector<4x8x1xf32>
      %27 = vector.broadcast %24 : vector<4x8x1xf32> to vector<4x8x8xf32>
      %28 = arith.subf %20, %27 : vector<4x8x8xf32>
      %29 = math.exp %28 : vector<4x8x8xf32>
      %c0_15 = arith.constant 0 : index
      %c0_16 = arith.constant 0 : index
      %c0_17 = arith.constant 0 : index
      %30 = vector.load %arg8[%c0_15, %c0_16, %c0_17] : memref<4x8x1xf32, #tpu.memory_space<vmem>>, vector<4x8x1xf32>
      %31 = arith.mulf %26, %30 : vector<4x8x1xf32>
      %cst_18 = arith.constant dense<0.000000e+00> : vector<4x8xf32>
      %32 = vector.multi_reduction <add>, %29, %cst_18 [2] : vector<4x8x8xf32> to vector<4x8xf32>
      %33 = vector.shape_cast %32 : vector<4x8xf32> to vector<4x8x1xf32>
      %34 = arith.addf %31, %33 : vector<4x8x1xf32>
      %c0_19 = arith.constant 0 : index
      %c0_20 = arith.constant 0 : index
      %c0_21 = arith.constant 0 : index
      %35 = vector.load %arg8[%c0_19, %c0_20, %c0_21] : memref<4x8x1xf32, #tpu.memory_space<vmem>>, vector<4x8x1xf32>
      tpu.vector_store %arg8[%c0_19, %c0_20, %c0_21], %34 {strides = array<i32>} : memref<4x8x1xf32, #tpu.memory_space<vmem>>, vector<4x8x1xf32>,
      %c0_22 = arith.constant 0 : index
      %c0_23 = arith.constant 0 : index
      %c0_24 = arith.constant 0 : index
      %36 = vector.load %arg9[%c0_22, %c0_23, %c0_24] : memref<4x8x8xf32, #tpu.memory_space<vmem>>, vector<4x8x8xf32>
      %37 = vector.broadcast %26 : vector<4x8x1xf32> to vector<4x8x8xf32>
      %38 = arith.mulf %37, %36 : vector<4x8x8xf32>
      %39 = arith.truncf %29 : vector<4x8x8xf32> to vector<4x8x8xbf16>
      %c0_25 = arith.constant 0 : index
      %c0_26 = arith.constant 0 : index
      %c0_27 = arith.constant 0 : index
      %c0_28 = arith.constant 0 : index
      %40 = vector.load %arg5[%c0_25, %c0_26, %c0_27, %c0_28] : memref<1x4x8x8xbf16, #tpu.memory_space<vmem>>, vector<1x4x8x8xbf16>
      %41 = vector.shape_cast %40 : vector<1x4x8x8xbf16> to vector<4x8x8xbf16>
      "tpu.trace_start"() <{level = 10 : i32, message = "hqk,hkd->hqd"}> : () -> ()
      %cst_29 = arith.constant dense<0.000000e+00> : vector<4x8x8xf32>
      %42 = tpu.matmul %39, %41, %cst_29 {dimension_numbers = #tpu.dot_dimension_numbers<[2], [1], [1], [2], [0, 0, 0, 1, 1, 2], [0], [0]>} : vector<4x8x8xbf16>, vector<4x8x8xbf16>, vector<4x8x8xf32> -> vector<4x8x8xf32>
      "tpu.trace_stop"() : () -> ()
      %43 = arith.addf %38, %42 : vector<4x8x8xf32>
      %c0_30 = arith.constant 0 : index
      %c0_31 = arith.constant 0 : index
      %c0_32 = arith.constant 0 : index
      %44 = vector.load %arg9[%c0_30, %c0_31, %c0_32] : memref<4x8x8xf32, #tpu.memory_space<vmem>>, vector<4x8x8xf32>
      tpu.vector_store %arg9[%c0_30, %c0_31, %c0_32], %43 {strides = array<i32>} : memref<4x8x8xf32, #tpu.memory_space<vmem>>, vector<4x8x8xf32>,
      %c0_33 = arith.constant 0 : index
      %c0_34 = arith.constant 0 : index
      %c0_35 = arith.constant 0 : index
      %45 = vector.load %arg7[%c0_33, %c0_34, %c0_35] : memref<4x8x1xf32, #tpu.memory_space<vmem>>, vector<4x8x1xf32>
      tpu.vector_store %arg7[%c0_33, %c0_34, %c0_35], %24 {strides = array<i32>} : memref<4x8x1xf32, #tpu.memory_space<vmem>>, vector<4x8x1xf32>,
      %c0_36 = arith.constant 0 : index
      %c0_37 = arith.constant 0 : index
      %c0_38 = arith.constant 0 : index
      %46 = vector.load %arg9[%c0_36, %c0_37, %c0_38] : memref<4x8x8xf32, #tpu.memory_space<vmem>>, vector<4x8x8xf32>
      %c0_39 = arith.constant 0 : index
      %c0_40 = arith.constant 0 : index
      %c0_41 = arith.constant 0 : index
      %47 = vector.load %arg8[%c0_39, %c0_40, %c0_41] : memref<4x8x1xf32, #tpu.memory_space<vmem>>, vector<4x8x1xf32>
      %48 = tpu.reciprocal %47 {approx = true} : vector<4x8x1xf32> -> vector<4x8x1xf32>
      %49 = vector.broadcast %48 : vector<4x8x1xf32> to vector<4x8x8xf32>
      %50 = arith.mulf %46, %49 : vector<4x8x8xf32>
      %c0_42 = arith.constant 0 : index
      %c0_43 = arith.constant 0 : index
      %c0_44 = arith.constant 0 : index
      %c0_45 = arith.constant 0 : index
      %51 = vector.load %arg6[%c0_42, %c0_43, %c0_44, %c0_45] : memref<1x4x8x8xf32, #tpu.memory_space<vmem>>, vector<1x4x8x8xf32>
      %52 = vector.shape_cast %51 : vector<1x4x8x8xf32> to vector<4x8x8xf32>
      %53 = vector.shape_cast %50 : vector<4x8x8xf32> to vector<1x4x8x8xf32>
      tpu.vector_store %arg6[%c0_42, %c0_43, %c0_44, %c0_45], %53 {strides = array<i32>} : memref<1x4x8x8xf32, #tpu.memory_space<vmem>>, vector<1x4x8x8xf32>,
    } else {
    }
    return
  }
  func.func @transform_0(%arg0: i32, %arg1: i32, %arg2: i32) -> (i32, i32, i32, i32) {
    %c0_i32 = arith.constant 0 : i32
    %c0_i32_0 = arith.constant 0 : i32
    %c0_i32_1 = arith.constant 0 : i32
    return %arg0, %c0_i32, %arg1, %c0_i32_0 : i32, i32, i32, i32
  }
  func.func @transform_1(%arg0: i32, %arg1: i32, %arg2: i32) -> (i32, i32, i32, i32) {
    %0 = arith.minsi %arg2, %arg1 : i32
    %c0_i32 = arith.constant 0 : i32
    %c0_i32_0 = arith.constant 0 : i32
    %c0_i32_1 = arith.constant 0 : i32
    return %arg0, %c0_i32, %0, %c0_i32_0 : i32, i32, i32, i32
  }
  func.func @transform_2(%arg0: i32, %arg1: i32, %arg2: i32) -> (i32, i32, i32, i32) {
    %0 = arith.minsi %arg2, %arg1 : i32
    %c0_i32 = arith.constant 0 : i32
    %c0_i32_0 = arith.constant 0 : i32
    %c0_i32_1 = arith.constant 0 : i32
    return %arg0, %c0_i32, %0, %c0_i32_0 : i32, i32, i32, i32
  }
  func.func @transform_3(%arg0: i32, %arg1: i32, %arg2: i32) -> (i32, i32, i32, i32) {
    %c0_i32 = arith.constant 0 : i32
    %c0_i32_0 = arith.constant 0 : i32
    %c0_i32_1 = arith.constant 0 : i32
    return %arg0, %c0_i32, %arg1, %c0_i32_0 : i32, i32, i32, i32
  }
}

module attributes {stable_mosaic.version = 11 : i64} {
  func.func @mlp_kernel(%arg0: i32, %arg1: i32, %arg2: memref<1x8x32xf32, #tpu.memory_space<vmem>>, %arg3: memref<1x8x32xf32, #tpu.memory_space<vmem>>, %arg4: memref<1x32xf32, #tpu.memory_space<vmem>>, %arg5: memref<1x32xf32, #tpu.memory_space<vmem>>, %arg6: memref<1x32x128xbf16, #tpu.memory_space<vmem>>, %arg7: memref<1x1x128xf32, #tpu.memory_space<vmem>>, %arg8: memref<1x128x32xbf16, #tpu.memory_space<vmem>>, %arg9: memref<1x32xf32, #tpu.memory_space<vmem>>, %arg10: memref<1x8x32xf32, #tpu.memory_space<vmem>>) attributes {dimension_semantics = [#tpu.dimension_semantics<parallel>, #tpu.dimension_semantics<parallel>], iteration_bounds = array<i64: 2, 1>, scalar_prefetch = 0 : i64, scratch_operands = 0 : i64, tpu.core_type = #tpu.core_type<tc>, window_params = [{transform_indices = @transform_0, window_bounds = array<i64: 1, 8, 32>}, {transform_indices = @transform_1, window_bounds = array<i64: 1, 8, 32>}, {pipeline_mode = #tpu.pipeline_mode<synchronous>, transform_indices = @transform_2, window_bounds = array<i64: 1, 32>}, {pipeline_mode = #tpu.pipeline_mode<synchronous>, transform_indices = @transform_3, window_bounds = array<i64: 1, 32>}, {pipeline_mode = #tpu.pipeline_mode<synchronous>, transform_indices = @transform_4, window_bounds = array<i64: 1, 32, 128>}, {pipeline_mode = #tpu.pipeline_mode<synchronous>, transform_indices = @transform_5, window_bounds = array<i64: 1, 1, 128>}, {pipeline_mode = #tpu.pipeline_mode<synchronous>, transform_indices = @transform_6, window_bounds = array<i64: 1, 128, 32>}, {pipeline_mode = #tpu.pipeline_mode<synchronous>, transform_indices = @transform_7, window_bounds = array<i64: 1, 32>}, {transform_indices = @transform_8, window_bounds = array<i64: 1, 8, 32>}]} {
    %c0 = arith.constant 0 : index
    %c0_0 = arith.constant 0 : index
    %c0_1 = arith.constant 0 : index
    %0 = vector.load %arg2[%c0, %c0_0, %c0_1] : memref<1x8x32xf32, #tpu.memory_space<vmem>>, vector<1x8x32xf32>
    %1 = vector.shape_cast %0 : vector<1x8x32xf32> to vector<8x32xf32>
    %c0_2 = arith.constant 0 : index
    %c0_3 = arith.constant 0 : index
    %c0_4 = arith.constant 0 : index
    %2 = vector.load %arg3[%c0_2, %c0_3, %c0_4] : memref<1x8x32xf32, #tpu.memory_space<vmem>>, vector<1x8x32xf32>
    %3 = vector.shape_cast %2 : vector<1x8x32xf32> to vector<8x32xf32>
    %4 = arith.addf %1, %3 : vector<8x32xf32>
    %c0_5 = arith.constant 0 : index
    %c0_6 = arith.constant 0 : index
    %5 = vector.load %arg4[%c0_5, %c0_6] : memref<1x32xf32, #tpu.memory_space<vmem>>, vector<1x32xf32>
    %6 = vector.shape_cast %5 : vector<1x32xf32> to vector<32xf32>
    %c0_7 = arith.constant 0 : index
    %c0_8 = arith.constant 0 : index
    %7 = vector.load %arg5[%c0_7, %c0_8] : memref<1x32xf32, #tpu.memory_space<vmem>>, vector<1x32xf32>
    %8 = vector.shape_cast %7 : vector<1x32xf32> to vector<32xf32>
    %cst = arith.constant dense<0.000000e+00> : vector<8xf32>
    %9 = vector.multi_reduction <add>, %4, %cst [1] : vector<8x32xf32> to vector<8xf32>
    %10 = vector.shape_cast %9 : vector<8xf32> to vector<8x1xf32>
    %cst_9 = arith.constant 3.200000e+01 : f32
    %11 = vector.broadcast %cst_9 : f32 to vector<8x1xf32>
    %12 = arith.divf %10, %11 : vector<8x1xf32>
    %13 = vector.broadcast %12 : vector<8x1xf32> to vector<8x32xf32>
    %14 = arith.subf %4, %13 : vector<8x32xf32>
    %15 = arith.mulf %14, %14 : vector<8x32xf32>
    %cst_10 = arith.constant dense<0.000000e+00> : vector<8xf32>
    %16 = vector.multi_reduction <add>, %15, %cst_10 [1] : vector<8x32xf32> to vector<8xf32>
    %17 = vector.shape_cast %16 : vector<8xf32> to vector<8x1xf32>
    %cst_11 = arith.constant 3.200000e+01 : f32
    %18 = vector.broadcast %cst_11 : f32 to vector<8x1xf32>
    %19 = arith.divf %17, %18 : vector<8x1xf32>
    %20 = vector.broadcast %12 : vector<8x1xf32> to vector<8x32xf32>
    %21 = arith.subf %4, %20 : vector<8x32xf32>
    %cst_12 = arith.constant 9.99999974E-6 : f32
    %22 = vector.broadcast %cst_12 : f32 to vector<8x1xf32>
    %23 = arith.addf %19, %22 : vector<8x1xf32>
    %24 = math.rsqrt %23 : vector<8x1xf32>
    %25 = vector.broadcast %24 : vector<8x1xf32> to vector<8x32xf32>
    %26 = arith.mulf %21, %25 : vector<8x32xf32>
    %27 = vector.shape_cast %6 : vector<32xf32> to vector<1x32xf32>
    %28 = vector.broadcast %27 : vector<1x32xf32> to vector<8x32xf32>
    %29 = arith.mulf %26, %28 : vector<8x32xf32>
    %30 = vector.shape_cast %8 : vector<32xf32> to vector<1x32xf32>
    %31 = vector.broadcast %30 : vector<1x32xf32> to vector<8x32xf32>
    %32 = arith.addf %29, %31 : vector<8x32xf32>
    %33 = arith.truncf %32 : vector<8x32xf32> to vector<8x32xbf16>
    %cst_13 = arith.constant 0.000000e+00 : f32
    %34 = vector.broadcast %cst_13 : f32 to vector<8x32xf32>
    %c0_i32 = arith.constant 0 : i32
    %35 = arith.index_cast %c0_i32 : i32 to index
    %c0_14 = arith.constant 0 : index
    %c0_15 = arith.constant 0 : index
    %36 = vector.load %arg6[%35, %c0_14, %c0_15] : memref<1x32x128xbf16, #tpu.memory_space<vmem>>, vector<1x32x128xbf16>
    %37 = vector.shape_cast %36 : vector<1x32x128xbf16> to vector<32x128xbf16>
    %cst_16 = arith.constant dense<0.000000e+00> : vector<8x128xf32>
    %38 = tpu.matmul %33, %37, %cst_16 {dimension_numbers = #tpu.dot_dimension_numbers<[1], [0], [0], [1], [0, 0, 1, 1], [], []>} : vector<8x32xbf16>, vector<32x128xbf16>, vector<8x128xf32> -> vector<8x128xf32>
    %39 = arith.index_cast %c0_i32 : i32 to index
    %c0_17 = arith.constant 0 : index
    %c0_18 = arith.constant 0 : index
    %40 = vector.load %arg7[%39, %c0_17, %c0_18] : memref<1x1x128xf32, #tpu.memory_space<vmem>>, vector<1x1x128xf32>
    %41 = vector.shape_cast %40 : vector<1x1x128xf32> to vector<1x128xf32>
    %42 = vector.broadcast %41 : vector<1x128xf32> to vector<8x128xf32>
    %43 = arith.addf %38, %42 : vector<8x128xf32>
    %cst_19 = arith.constant 5.000000e-01 : f32
    %44 = vector.broadcast %cst_19 : f32 to vector<8x128xf32>
    %45 = arith.mulf %44, %43 : vector<8x128xf32>
    %cst_20 = arith.constant 4.471500e-02 : f32
    %46 = vector.broadcast %cst_20 : f32 to vector<8x128xf32>
    %47 = arith.mulf %46, %43 : vector<8x128xf32>
    %48 = arith.mulf %47, %43 : vector<8x128xf32>
    %49 = arith.mulf %48, %43 : vector<8x128xf32>
    %50 = arith.addf %43, %49 : vector<8x128xf32>
    %cst_21 = arith.constant 0.797884583 : f32
    %51 = vector.broadcast %cst_21 : f32 to vector<8x128xf32>
    %52 = arith.mulf %51, %50 : vector<8x128xf32>
    %53 = math.tanh %52 : vector<8x128xf32>
    %cst_22 = arith.constant 1.000000e+00 : f32
    %54 = vector.broadcast %cst_22 : f32 to vector<8x128xf32>
    %55 = arith.addf %54, %53 : vector<8x128xf32>
    %56 = arith.mulf %45, %55 : vector<8x128xf32>
    %57 = arith.truncf %56 : vector<8x128xf32> to vector<8x128xbf16>
    %58 = arith.index_cast %c0_i32 : i32 to index
    %c0_23 = arith.constant 0 : index
    %c0_24 = arith.constant 0 : index
    %59 = vector.load %arg8[%58, %c0_23, %c0_24] : memref<1x128x32xbf16, #tpu.memory_space<vmem>>, vector<1x128x32xbf16>
    %60 = vector.shape_cast %59 : vector<1x128x32xbf16> to vector<128x32xbf16>
    %cst_25 = arith.constant dense<0.000000e+00> : vector<8x32xf32>
    %61 = tpu.matmul %57, %60, %cst_25 {dimension_numbers = #tpu.dot_dimension_numbers<[1], [0], [0], [1], [0, 0, 1, 1], [], []>} : vector<8x128xbf16>, vector<128x32xbf16>, vector<8x32xf32> -> vector<8x32xf32>
    %62 = arith.addf %34, %61 : vector<8x32xf32>
    %c1_i32 = arith.constant 1 : i32
    %63 = arith.addf %4, %62 : vector<8x32xf32>
    %c0_26 = arith.constant 0 : index
    %c0_27 = arith.constant 0 : index
    %64 = vector.load %arg9[%c0_26, %c0_27] : memref<1x32xf32, #tpu.memory_space<vmem>>, vector<1x32xf32>
    %65 = vector.shape_cast %64 : vector<1x32xf32> to vector<32xf32>
    %66 = vector.shape_cast %65 : vector<32xf32> to vector<1x32xf32>
    %67 = vector.broadcast %66 : vector<1x32xf32> to vector<8x32xf32>
    %68 = arith.addf %63, %67 : vector<8x32xf32>
    %c0_28 = arith.constant 0 : index
    %c0_29 = arith.constant 0 : index
    %c0_30 = arith.constant 0 : index
    %69 = vector.load %arg10[%c0_28, %c0_29, %c0_30] : memref<1x8x32xf32, #tpu.memory_space<vmem>>, vector<1x8x32xf32>
    %70 = vector.shape_cast %69 : vector<1x8x32xf32> to vector<8x32xf32>
    %71 = vector.shape_cast %68 : vector<8x32xf32> to vector<1x8x32xf32>
    tpu.vector_store %arg10[%c0_28, %c0_29, %c0_30], %71 {strides = array<i32>} : memref<1x8x32xf32, #tpu.memory_space<vmem>>, vector<1x8x32xf32>,
    return
  }
  func.func @transform_0(%arg0: i32, %arg1: i32) -> (i32, i32, i32) {
    %c0_i32 = arith.constant 0 : i32
    %c0_i32_0 = arith.constant 0 : i32
    return %arg0, %arg1, %c0_i32 : i32, i32, i32
  }
  func.func @transform_1(%arg0: i32, %arg1: i32) -> (i32, i32, i32) {
    %c0_i32 = arith.constant 0 : i32
    %c0_i32_0 = arith.constant 0 : i32
    return %arg0, %arg1, %c0_i32 : i32, i32, i32
  }
  func.func @transform_2(%arg0: i32, %arg1: i32) -> (i32, i32) {
    %c0_i32 = arith.constant 0 : i32
    %c0_i32_0 = arith.constant 0 : i32
    %c0_i32_1 = arith.constant 0 : i32
    return %c0_i32, %c0_i32_0 : i32, i32
  }
  func.func @transform_3(%arg0: i32, %arg1: i32) -> (i32, i32) {
    %c0_i32 = arith.constant 0 : i32
    %c0_i32_0 = arith.constant 0 : i32
    %c0_i32_1 = arith.constant 0 : i32
    return %c0_i32, %c0_i32_0 : i32, i32
  }
  func.func @transform_4(%arg0: i32, %arg1: i32) -> (i32, i32, i32) {
    %c0_i32 = arith.constant 0 : i32
    %c0_i32_0 = arith.constant 0 : i32
    %c0_i32_1 = arith.constant 0 : i32
    %c0_i32_2 = arith.constant 0 : i32
    return %c0_i32, %c0_i32_0, %c0_i32_1 : i32, i32, i32
  }
  func.func @transform_5(%arg0: i32, %arg1: i32) -> (i32, i32, i32) {
    %c0_i32 = arith.constant 0 : i32
    %c0_i32_0 = arith.constant 0 : i32
    %c0_i32_1 = arith.constant 0 : i32
    %c0_i32_2 = arith.constant 0 : i32
    return %c0_i32, %c0_i32_0, %c0_i32_1 : i32, i32, i32
  }
  func.func @transform_6(%arg0: i32, %arg1: i32) -> (i32, i32, i32) {
    %c0_i32 = arith.constant 0 : i32
    %c0_i32_0 = arith.constant 0 : i32
    %c0_i32_1 = arith.constant 0 : i32
    %c0_i32_2 = arith.constant 0 : i32
    return %c0_i32, %c0_i32_0, %c0_i32_1 : i32, i32, i32
  }
  func.func @transform_7(%arg0: i32, %arg1: i32) -> (i32, i32) {
    %c0_i32 = arith.constant 0 : i32
    %c0_i32_0 = arith.constant 0 : i32
    %c0_i32_1 = arith.constant 0 : i32
    return %c0_i32, %c0_i32_0 : i32, i32
  }
  func.func @transform_8(%arg0: i32, %arg1: i32) -> (i32, i32, i32) {
    %c0_i32 = arith.constant 0 : i32
    %c0_i32_0 = arith.constant 0 : i32
    return %arg0, %arg1, %c0_i32 : i32, i32, i32
  }
}

</mosaic_0001>

<bundles_post_ra>
// kernel: gpt_block_forward.3
= control target key start
LH: loop header
LB: loop body
LE: loop exit
PB: predicated region body
PF: predicated region fallthrough
CT: control target
= control target key end

     0   :  { %s1018_s17 = smov 0   ;;  %s1020_s18 = smov 0   ;;  %s1105_s0 = inlined_call_operand.vmem [shape: f32[2,8,32], index: 0, kind: input, shape index: {}]   ;;  %s1106_s1 = inlined_call_operand.vmem [shape: f32[1,32], index: 1, kind: input, shape index: {}]   ;;  %s1107_s2 = inlined_call_operand.vmem [shape: f32[1,32], index: 2, kind: input, shape index: {}]   ;;  %s1108_s3 = inlined_call_operand.vmem [shape: bf16[32,32], index: 3, kind: input, shape index: {}]   ;;  %s1109_s4 = inlined_call_operand.vmem [shape: f32[1,32], index: 4, kind: input, shape index: {}]   ;;  %s1110_s5 = inlined_call_operand.vmem [shape: bf16[32,32], index: 5, kind: input, shape index: {}]   ;;  %s1111_s6 = inlined_call_operand.vmem [shape: f32[1,32], index: 6, kind: input, shape index: {}]   ;;  %s1112_s7 = inlined_call_operand.vmem [shape: bf16[32,32], index: 7, kind: input, shape index: {}]   ;;  %s1113_s8 = inlined_call_operand.vmem [shape: f32[1,32], index: 8, kind: input, shape index: {}]   ;;  %s1114_s9 = inlined_call_operand.vmem [shape: bf16[2,8,32], index: 9, kind: output, shape index: {0}]   ;;  %s1115_s10 = inlined_call_operand.vmem [shape: bf16[2,8,32], index: 10, kind: output, shape index: {1}]   ;;  %s1116_s11 = inlined_call_operand.vmem [shape: bf16[2,8,32], index: 11, kind: output, shape index: {2}]  }
   0x1   :  { %s1022_s19 = smov 0  }
   0x2 LB: > { %s34_s20 = sadd.s32 1, %s950_s18  ;;  %p844_p0 = scmp.ge.s32.totalorder %s954_s19, 1  ;;  %s954_s19 = sphi %s1022_s19, %s22_s19   ;;  %s950_s18 = sphi %s1020_s18, %s1118_s18   ;;  %s946_s17 = sphi %s1018_s17, %s1117_s17  }
   0x3   : > { %p36_p1 = scmp.ge.s32.totalorder %s34_s20, 2  ;;  %p364_p2 = scmp.lt.s32.totalorder %s954_s19, 3 }
   0x5   : > { %s1120_s20 = smov (%p36_p1, %s34_s20), 0  ;;  %p365_p3 = pnand %p844_p0, %p364_p2 }
   0x6   : > { %p422_p4 = scmp.lt.s32.totalorder (!%p365_p3), %s946_s17, 1  ;;  %vm454_vm0 = vcmask (!%p365_p3), 261120   ;;  %v924_v7 = vld [vmem:[%s1108_s3] sm:$0xff] (!%p365_p3)   ;;  %v956_v9 = vmov (!%p365_p3), 0.0   ;;  %v926_v10 = vld [vmem:[%s1108_s3 + $0x8] sm:$0xff] (!%p365_p3)   ;;  %vm957_vm1 = vmmov (!%p365_p3), 0  }
   0x7   : > { %368 = sbr.rel (%p365_p3) target bundleno = 558 (0x22e), region = 56  ;;  %v925_v8 = vld [vmem:[%s1110_s5] sm:$0xff] (!%p365_p3)   ;;  %874 = vmatprep.subr.bf16.mxu0 (!%p365_p3), %v956_v9  ;;  %882 = vmatprep.subr.bf16.mxu1 (!%p365_p3), %v956_v9  ;;  %v927_v11 = vld [vmem:[%s1110_s5 + $0x8] sm:$0xff] (!%p365_p3)   ;;  %vm678_vm2 = vcmask (!%p365_p3), 257024  }
   0x8   : > { %875 = vmatpush3.bf16.msra.mxu0 (!%p365_p3), %v924_v7  ;;  %883 = vmatpush3.bf16.msra.mxu1 (!%p365_p3), %v925_v8  ;;  %v849_v16 = vld [vmem:[%s1106_s1] ss:$0 sm:$0xff] (!%p365_p3)  ;;  %v929_v23 = vld [vmem:[%s1112_s7 + $0x8] sm:$0xff] (!%p365_p3)  }
   0x9   : > { %876 = vmatprep.subr.bf16.mxu0 (!%p365_p3), %v956_v9  ;;  %884 = vmatprep.subr.bf16.mxu1 (!%p365_p3), %v956_v9  ;;  %v850_v18 = vld [vmem:[%s1107_s2] ss:$0 sm:$0xff] (!%p365_p3) }
   0xa   : > { %878 = vmatprep.mubr.msk.bf16.mxu0 (!%p365_p3), %vm957_vm1, %v956_v9  ;;  %886 = vmatprep.mubr.msk.bf16.mxu1 (!%p365_p3), %vm957_vm1, %v956_v9  ;;  %v928_v21 = vld [vmem:[%s1112_s7] sm:$0xff] (!%p365_p3)  }
   0xb   : > { %v851_v24 = vld [vmem:[%s1109_s4] ss:$0 sm:$0xff] (!%p365_p3) }
   0xc   : > { %877 = vmatpush3.bf16.msra.mxu0 (!%p365_p3), %v926_v10  ;;  %885 = vmatpush3.bf16.msra.mxu1 (!%p365_p3), %v927_v11  ;;  %v855_v25 = vld [vmem:[%s1111_s6] ss:$0 sm:$0xff] (!%p365_p3) }
   0xd   : > { %890 = vmatprep.subr.bf16.mxu0 (!%p365_p3), %v956_v9  ;;  %v859_v39 = vld [vmem:[%s1113_s8] ss:$0 sm:$0xff] (!%p365_p3) }
   0xe   : > { %s1122_s17 = smov (!%p422_p4, %s946_s17), 1 }
   0xf   : > { %s845_s21 = sshll.u32 %s1122_s17, 3  ;;  %s846_s30 = sshll.u32 %s1122_s17, 2 }
  0x10   : > { %s428_s24 = scalar_lea.vmem %s1105_s0, %s845_s21  ;;  %s442_s14 = scalar_lea.vmem %s1115_s10, %s846_s30 }
  0x11   : > { %v451_v0 = vld [vmem:[%s428_s24] sm:$0xff]  ;;  %s435_s17 = scalar_lea.vmem %s1114_s9, %s846_s30  ;;  %s449_s25 = scalar_lea.vmem %s1116_s11, %s846_s30 }
  0x12   : > { %v455_v1 = vsel %vm454_vm0, %v451_v0, 0.0 }
  0x13   : > { %456 = vadd.xlane.f32.xlu0 %v455_v1 }
  0xa0   : > { %v457_v2 = vpop.xlane.xlu0 %456 }
  0xa1   : > { %v459_v3 = vmul.f32 0.03125, %v457_v2 }
  0xa3   : > { %v460_v4 = vsub.f32 %v451_v0, %v459_v3 }
  0xa5   : > { %v461_v5 = vmul.f32 %v460_v4, %v460_v4 }
  0xa7   : > { %v462_v6 = vsel %vm454_vm0, %v461_v5, 0.0 }
  0xa8   : > { %463 = vadd.xlane.f32.xlu0 %v462_v6 }
 0x135   : > { %v464_v12 = vpop.xlane.xlu0 %463 }
 0x136   : > { %v465_v13 = vmul.f32 0.03125, %v464_v12 }
 0x138   : > { %v466_v14 = vadd.f32 1e-05, %v465_v13 }
 0x13a   : > { %930 = vrsqrt.f32 %v466_v14 }
 0x144   : > { %v931_v15 = vpop.eup %930 }
 0x145   : > { %v468_v17 = vmul.f32 %v931_v15, %v460_v4 }
 0x147   : > { %v475_v19 = vmul.f32 %v849_v16, %v468_v17 }
 0x149   : > { %v482_v20 = vadd.f32 %v850_v18, %v475_v19 }
 0x14b   : > { %v483_v22 = vpack.c.bf16 %v482_v20, %v482_v20 }
 0x14d   : > { %879 = vmatmul.mubr.msk.bf16.vlgmr.msra.gmra.mrb[0].mxu0 %vm454_vm0, %v483_v22  ;;  %887 = vmatmul.mubr.msk.bf16.vlgmr.msra.gmra.mrb[0].mxu1 %vm454_vm0, %v483_v22 }
 0x14e   : > { %891 = vmatpush3.bf16.msra.mxu0 %v928_v21  ;;  %894 = vmatprep.mubr.msk.bf16.mxu0 %vm957_vm1, %v956_v9 }
 0x14f   : > { %892 = vmatprep.subr.bf16.mxu0 %v956_v9 }
 0x152   : > { %893 = vmatpush3.bf16.msra.mxu0 %v929_v23 }
 0x155   : > { %895 = vmatmul.mubr.msk.bf16.vlgmr.msra.gmra.mrb[4].mxu0 %vm454_vm0, %v483_v22 }
 0x220   : > { %v544_v26 = vpop.f32.mrb[0].mxu0  ;;  %v607_v27 = vpop.f32.mrb[0].mxu1 }
 0x221   : > { %v545_v28 = vadd.f32 %v851_v24, %v544_v26  ;;  %v608_v29 = vadd.f32 %v855_v25, %v607_v27  ;;  %v880_v30 = vpop.f32.mrb[1].mxu0  ;;  %v888_v31 = vpop.f32.mrb[1].mxu1 }
 0x222   : > { %v547_v32 = vpop.f32.mrb[2].mxu0  ;;  %v610_v33 = vpop.f32.mrb[2].mxu1 }
 0x223   : > { %v676_v34 = vmul.f32 0.35355338, %v545_v28  ;;  %v680_v35 = vpack.c.bf16 %v608_v29, %v608_v29  ;;  %v881_v36 = vpop.f32.mrb[3].mxu0  ;;  %v889_v37 = vpop.f32.mrb[3].mxu1 }
 0x225   : > { %v677_v38 = vpack.c.bf16 %v676_v34, %v676_v34  ;;  %681 = vst.msk [vmem:[%s442_s14] sm:$0xf] %vm678_vm2, %v680_v35 }
 0x227   : > { %679 = vst.msk [vmem:[%s435_s17] sm:$0xf] %vm678_vm2, %v677_v38 }
 0x228   : > { %v670_v40 = vpop.f32.mrb[4].mxu0 }
 0x229   : > { %v671_v41 = vadd.f32 %v859_v39, %v670_v40  ;;  %v896_v42 = vpop.f32.mrb[5].mxu0 }
 0x22a   : > { %v673_v43 = vpop.f32.mrb[6].mxu0 }
 0x22b   : > { %v682_v44 = vpack.c.bf16 %v671_v41, %v671_v41  ;;  %v897_v45 = vpop.f32.mrb[7].mxu0 }
 0x22d   : > { %683 = vst.msk [vmem:[%s449_s25] sm:$0xf] %vm678_vm2, %v682_v44 }
 0x22e PF: > { %s22_s19 = sadd.s32 1, %s954_s19   ;;  %s1117_s17 = smov %s950_s18 }
 0x22f   : > { %p19_p5 = scmp.ge.s32.totalorder %s22_s19, 4   ;;  %s1118_s18 = smov %s1120_s20 }
 0x231   :  { %21 = sbr.rel (!%p19_p5) target bundleno = 2 (0x2), region = 110 }

// kernel: gpt_block_forward.5
= control target key start
LH: loop header
LB: loop body
LE: loop exit
PB: predicated region body
PF: predicated region fallthrough
CT: control target
= control target key end

     0   :  { %13 = vsyncpa [#allocation3], 0  ;;  %s1113_s0 = inlined_call_operand.vmem [shape: f32[2,8,32], index: 0, kind: input, shape index: {}]   ;;  %s1114_s1 = inlined_call_operand.vmem [shape: f32[2,8,32], index: 1, kind: input, shape index: {}]   ;;  %s1115_s2 = inlined_call_operand.vmem [shape: f32[1,32], index: 2, kind: input, shape index: {}]   ;;  %s1116_s3 = inlined_call_operand.vmem [shape: f32[1,32], index: 3, kind: input, shape index: {}]   ;;  %s1117_s4 = inlined_call_operand.vmem [shape: bf16[1,32,128], index: 4, kind: input, shape index: {}]   ;;  %s1118_s5 = inlined_call_operand.vmem [shape: f32[1,1,128], index: 5, kind: input, shape index: {}]   ;;  %s1119_s6 = inlined_call_operand.vmem [shape: bf16[1,128,32], index: 6, kind: input, shape index: {}]   ;;  %s1120_s7 = inlined_call_operand.vmem [shape: f32[1,32], index: 7, kind: input, shape index: {}]   ;;  %s1121_s8 = inlined_call_operand.hbm [shape: f32[2,8,32], index: 8, kind: output, shape index: {}]  }
   0x1   :  { %15 = vsyncpa [#allocation3 + $0x1], 0  ;;  %s947_s27 = smov 0   ;;  %s949_s28 = smov 0  }
   0x2   :  { %s951_s29 = smov 0   ;;  %s953_s30 = smov 0  }
   0x3   :  { %s955_s9 = smov 0   ;;  %s957_s10 = smov 0  }
   0x4 LB: > { %s681_s11 = sadd.s32 4294967295, %s897_s10   ;;  %s682_s12 = sadd.s32 4294967294, %s897_s10   ;;  %s897_s10 = sphi %s957_s10, %s21_s10   ;;  %s893_s9 = sphi %s955_s9, %s1128_s9   ;;  %s889_s30 = sphi %s953_s30, %s1127_s30   ;;  %s885_s29 = sphi %s951_s29, %s1126_s29   ;;  %s881_s28 = sphi %s949_s28, %s1125_s28   ;;  %s877_s27 = sphi %s947_s27, %s1124_s27  }
   0x5   : > { %s33_s13 = sadd.s32 1, %s893_s9  ;;  %s224_s14 = sadd.s32 1, %s885_s29 }
   0x6   : > { %p35_p0 = scmp.ge.s32.totalorder %s33_s13, 2  ;;  %p234_p1 = scmp.ne.s32.totalorder %s885_s29, %s881_s28 }
   0x7   : > { %p235_p2 = scmp.eq.s32.totalorder %s681_s11, 1  ;;  %p240_p3 = scmp.ne.s32.totalorder %s881_s28, %s877_s27 }
   0x8   : > { %s1130_s13 = smov (%p35_p0, %s33_s13), 0  ;;  %p241_p5 = scmp.eq.s32.totalorder %s682_s12, 1 }
   0x9   : > { %p987_p4 = por %p235_p2, %p234_p1  ;;  %s219_s16 = ssub.s32 %s893_s9, %s1130_s13 }
   0xa   : > { %p685_p6 = scmp.ge.s32.totalorder %s897_s10, 1  ;;  %p222_p7 = scmp.eq.s32.totalorder %s219_s16, 0 }
   0xb   : > { %p994_p8 = por %p241_p5, %p240_p3  ;;  %p297_p9 = scmp.lt.s32.totalorder %s897_s10, 3 }
   0xc   : > { %s1000_s18 = scalar_select %p222_p7, %s885_s29, %s224_s14  }
   0xd   : > { %p298_p10 = pnand %p685_p6, %p297_p9 }
   0xe   : > { %p340_p11 = scmp.lt.s32.totalorder (!%p298_p10), %s889_s30, 1  ;;  %vm360_vm0 = vcmask (!%p298_p10), 261120   ;;  %v805_v9 = vld [vmem:[%s1117_s4] sm:$0xff] (!%p298_p10)   ;;  %v899_v10 = vmov (!%p298_p10), 0.0   ;;  %v806_v11 = vld [vmem:[%s1117_s4 + $0x8] sm:$0xff] (!%p298_p10)   ;;  %vm900_vm1 = vmmov (!%p298_p10), 0  }
   0xf   : > { %301 = sbr.rel (%p298_p10) target bundleno = 816 (0x330), region = 52  ;;  %720 = vmatprep.subr.bf16.mxu0 (!%p298_p10), %v899_v10  ;;  %728 = vmatprep.subr.bf16.mxu1 (!%p298_p10), %v899_v10  ;;  %v807_v12 = vld [vmem:[%s1119_s6] sm:$0xff] (!%p298_p10)   ;;  %v808_v23 = vld [vmem:[%s1119_s6 + $0x8] sm:$0xff] (!%p298_p10)   ;;  %v809_v24 = vld [vmem:[%s1119_s6 + $0x10] sm:$0xff] (!%p298_p10)   ;;  %s337_s14 = sand.u32 (!%p298_p10), 1, %s881_s28  }
  0x10   : > { %721 = vmatpush3.bf16.msra.mxu0 (!%p298_p10), %v805_v9  ;;  %724 = vmatprep.mubr.msk.bf16.mxu0 (!%p298_p10), %vm900_vm1, %v899_v10  ;;  %v689_v17 = vld [vmem:[%s1115_s2] ss:$0 sm:$0xff] (!%p298_p10)  ;;  %v810_v25 = vld [vmem:[%s1119_s6 + $0x18] sm:$0xff] (!%p298_p10)   ;;  %v812_v27 = vld [vmem:[%s1119_s6 + $0x28] sm:$0xff] (!%p298_p10)   ;;  %s686_s16 = sshll.u32 (!%p298_p10), %s337_s14, 3  ;;  %s705_s21 = sshll.u32 (!%p298_p10), %s889_s30, 7 }
  0x11   : > { %722 = vmatprep.subr.bf16.mxu0 (!%p298_p10), %v899_v10  ;;  %744 = vmatprep.mubr.msk.bf16.mxu1 (!%p298_p10), %vm900_vm1, %v899_v10  ;;  %v690_v19 = vld [vmem:[%s1116_s3] ss:$0 sm:$0xff] (!%p298_p10)  ;;  %v813_v28 = vld [vmem:[%s1119_s6 + $0x30] sm:$0xff] (!%p298_p10)   ;;  %v814_v29 = vld [vmem:[%s1119_s6 + $0x38] sm:$0xff] (!%p298_p10)   ;;  %s339_s22 = scalar_lea.vmem (!%p298_p10), [#allocation2], %s686_s16  ;;  %s901_s12 = smov (!%p298_p10), [#allocation2]  }
  0x12   : > { %729 = vmatpush3.bf16.msra.mxu1 (!%p298_p10), %v807_v12  ;;  %v811_v26 = vld [vmem:[%s1119_s6 + $0x20] sm:$0xff] (!%p298_p10)   ;;  %s823_s16 = sshll.u32 (!%p298_p10), %s901_s12, 4  ;;  %s824_s16 = int_to_ptr.vmem [resolvable:$false] %s823_s16 }
  0x13   : > { %730 = vmatprep.subr.bf16.mxu1 (!%p298_p10), %v899_v10  ;;  %v691_v30 = vld [vmem:[%s1118_s5] ss:$0 sm:$0xff] (!%p298_p10) }
  0x14   : > { %723 = vmatpush3.bf16.msra.mxu0 (!%p298_p10), %v806_v11  ;;  %v703_v47 = vld [vmem:[%s1120_s7] ss:$0 sm:$0xff] (!%p298_p10) }
  0x16   : > { %s341_s19 = scalar_select %p340_p11, %s889_s30, 1  ;;  %731 = vmatpush3.bf16.msra.mxu1 %v808_v23 }
  0x17   : > { %732 = vmatprep.subr.bf16.mxu1 %v899_v10  ;;  %s581_s30 = scalar_lea.sflag [#allocation3], %s337_s14 }
  0x18   : > { %s687_s20 = sshll.u32 %s341_s19, 3  ;;  %s825_s19 = scalar_lea.vmem %s824_s16, 256 }
  0x19   : > { %s346_s23 = scalar_lea.vmem %s1113_s0, %s687_s20  ;;  %s353_s26 = scalar_lea.vmem %s1114_s1, %s687_s20 }
  0x1a   : > { %v355_v0 = vld [vmem:[%s346_s23] sm:$0xff]  ;;  %733 = vmatpush3.bf16.msra.mxu1 %v809_v24  ;;  %s595_s23 = sshll.u32 %s339_s22, 4  ;;  %s1067_s23 = int_to_ptr.vmem [resolvable:$true] %s595_s23 }
  0x1b   : > { %v356_v1 = vld [vmem:[%s353_s26] sm:$0xff]  ;;  %734 = vmatprep.subr.bf16.mxu1 %v899_v10  ;;  %s1065_s26 = scalar_lea.hbm %s1121_s8, %s705_s21  ;;  %s819_s11 = scalar_lea.vmem %s1067_s23, 128 }
  0x1c   : > { %v1010_v2 = vadd.f32 %v356_v1, %v355_v0  ;;  %p820_p12 = scmp.ne.s32.totalorder %s1067_s23, %s819_s11  ;;  %p826_p1 = scmp.lt.s32.totalorder %s1067_s23, %s824_s16 }
  0x1d   : > { %p827_p2 = scmp.lt.s32.totalorder %s825_s19, %s819_s11 }
  0x1e   : > { %v361_v3 = vsel %vm360_vm0, %v1010_v2, 0.0  ;;  %735 = vmatpush3.bf16.msra.mxu1 %v810_v25  ;;  %p821_p13 = pnand %p820_p12, %p987_p4 }
  0x1f   : > { %362 = vadd.xlane.f32.xlu0 %v361_v3  ;;  %736 = vmatprep.subr.bf16.mxu1 %v899_v10  ;;  %p828_p3 = por %p827_p2, %p826_p1 }
  0x20   : > { %p822_p0 = pneg %p821_p13 }
  0x22   : > { %737 = vmatpush3.bf16.msra.mxu1 %v811_v26  ;;  %p829_p5 = pnand %p828_p3, %p822_p0 }
  0x23   : > { %738 = vmatprep.subr.bf16.mxu1 %v899_v10 }
  0x26   : > { %739 = vmatpush3.bf16.msra.mxu1 %v812_v27 }
  0x27   : > { %740 = vmatprep.subr.bf16.mxu1 %v899_v10 }
  0x2a   : > { %741 = vmatpush3.bf16.msra.mxu1 %v813_v28 }
  0x2b   : > { %742 = vmatprep.subr.bf16.mxu1 %v899_v10 }
  0x2e   : > { %743 = vmatpush3.bf16.msra.mxu1 %v814_v29 }
  0xac   : > { %v363_v4 = vpop.xlane.xlu0 %362 }
  0xad   : > { %v365_v5 = vmul.f32 0.03125, %v363_v4 }
  0xaf   : > { %v366_v6 = vsub.f32 %v1010_v2, %v365_v5 }
  0xb1   : > { %v367_v7 = vmul.f32 %v366_v6, %v366_v6 }
  0xb3   : > { %v368_v8 = vsel %vm360_vm0, %v367_v7, 0.0 }
  0xb4   : > { %369 = vadd.xlane.f32.xlu0 %v368_v8 }
 0x141   : > { %v370_v13 = vpop.xlane.xlu0 %369 }
 0x142   : > { %v371_v14 = vmul.f32 0.03125, %v370_v13 }
 0x144   : > { %v372_v15 = vadd.f32 1e-05, %v371_v14 }
 0x146   : > { %815 = vrsqrt.f32 %v372_v15 }
 0x150   : > { %v816_v16 = vpop.eup %815 }
 0x151   : > { %v374_v18 = vmul.f32 %v816_v16, %v366_v6 }
 0x153   : > { %v381_v20 = vmul.f32 %v689_v17, %v374_v18 }
 0x155   : > { %v388_v21 = vadd.f32 %v690_v19, %v381_v20 }
 0x157   : > { %v389_v22 = vpack.c.bf16 %v388_v21, %v388_v21 }
 0x159   : > { %725 = vmatmul.mubr.msk.bf16.vlgmr.msra.gmra.mrb[0].mxu0 %vm360_vm0, %v389_v22 }
 0x22c   : > { %v450_v31 = vpop.f32.mrb[0].mxu0 }
 0x22d   : > { %v451_v32 = vadd.f32 %v691_v30, %v450_v31  ;;  %v726_v33 = vpop.f32.mrb[1].mxu0 }
 0x22e   : > { %v453_v34 = vpop.f32.mrb[2].mxu0 }
 0x22f   : > { %v457_v35 = vmul.f32 0.044715, %v451_v32  ;;  %v727_v36 = vpop.f32.mrb[3].mxu0  ;;  %v456_v42 = vmul.f32 0.5, %v451_v32 }
 0x231   : > { %v458_v37 = vmul.f32 %v457_v35, %v451_v32 }
 0x233   : > { %v459_v38 = vmul.f32 %v458_v37, %v451_v32 }
 0x235   : > { %v460_v39 = vadd.f32 %v459_v38, %v451_v32 }
 0x237   : > { %v461_v40 = vmul.f32 0.7978846, %v460_v39 }
 0x239   : > { %817 = vtanh.f32 %v461_v40 }
 0x243   : > { %v818_v41 = vpop.eup %817 }
 0x244   : > { %v463_v43 = vadd.f32 1.0, %v818_v41 }
 0x246   : > { %v464_v44 = vmul.f32 %v463_v43, %v456_v42 }
 0x248   : > { %v465_v45 = vpack.c.bf16 %v464_v44, %v464_v44 }
 0x24a   : > { %745 = vmatmul.mubr.bf16.vlgmr.msra.gmra.mrb[0].mxu1 %v465_v45 }
 0x31d   : > { %v564_v46 = vpop.f32.mrb[0].mxu1 }
 0x31e   : > { %v570_v48 = vadd.f32 %v564_v46, %v1010_v2  ;;  %v746_v49 = vpop.f32.mrb[1].mxu1 }
 0x31f   : > { %v567_v50 = vpop.f32.mrb[2].mxu1 }
 0x320   : > { %v578_v51 = vadd.f32 %v703_v47, %v570_v48  ;;  %v747_v52 = vpop.f32.mrb[3].mxu1 }
 0x322   : > { %579 = vst.msk [vmem:[%s339_s22] sm:$0xff] %vm360_vm0, %v578_v51 }
 0x323   : > { %832 = shalt.err (!%p829_p5)
}
 0x324   : > { %s833_s14 = scalar_lea.hbm %s1065_s26, 128  ;;  %s837_s22 = scalar_lea.hbm %s1121_s8, 256 }
 0x325   : > { %p834_p6 = scmp.ne.s32.totalorder %s1065_s26, %s833_s14  ;;  %p838_p10 = scmp.lt.u32.totalorder %s1065_s26, %s1121_s8 }
 0x326   : > { %p839_p11 = scmp.lt.u32.totalorder %s837_s22, %s833_s14  ;;  %p841_p13 = scmp.lt.u32.totalorder %s833_s14, %s1065_s26 }
 0x327   : > { %p835_p7 = pnand %p834_p6, %p987_p4 }
 0x328   : > { %p840_p12 = por %p839_p11, %p838_p10 }
 0x329   : > { %p836_p9 = pneg %p835_p7 }
 0x32a   : > { %p842_p0 = por %p841_p13, %p840_p12 }
 0x32c   : > { %p843_p1 = pnand %p842_p0, %p836_p9 }
 0x32e   : > { %846 = shalt.err (!%p843_p1)
}
 0x32f   : > { %748 = dma.vmem_to_hbm [thread:$0]  (%p987_p4), %s1067_s23, 128, %s1065_s26, %s581_s30  }
 0x330 PF: > { %p754_p2 = scmp.ge.s32.totalorder %s897_s10, 2  ;;  %s607_s11 = sand.u32 1, %s877_s27  }
 0x331   : > { %s608_s12 = scalar_lea.sflag [#allocation3], %s607_s11 }
 0x332   : > { %p751_p3 = pnand %p754_p2, %p994_p8 }
 0x334   : > { %872 = dma.done.wait (!%p751_p3), %s608_s12, 128  }
 0x335   : > { %874 = vsyncadd (!%p751_p3), %s608_s12, 4294967168  ;;  %s21_s10 = sadd.s32 1, %s897_s10   ;;  %s1124_s27 = smov %s881_s28 }
 0x336   : > { %p18_p5 = scmp.ge.s32.totalorder %s21_s10, 4   ;;  %s1125_s28 = smov %s885_s29 }
 0x337   : > { %s1126_s29 = smov %s1000_s18  ;;  %s1127_s30 = smov %s893_s9 }
 0x338   : > { %s1128_s9 = smov %s1130_s13  ;;  %20 = sbr.rel (!%p18_p5) target bundleno = 4 (0x4), region = 90 }
 0x33f   :  { %613 = vsyncpa [#allocation3], 1 }
 0x340   :  { %615 = vsyncpa [#allocation3 + $0x1], 1 }

// kernel: gpt_block_forward.4
= control target key start
LH: loop header
LB: loop body
LE: loop exit
PB: predicated region body
PF: predicated region fallthrough
CT: control target
= control target key end

     0   :  { %s1738_s12 = smov 0   ;;  %s1740_s13 = smov 0   ;;  %s1931_s0 = inlined_call_operand.vmem [shape: bf16[2,4,8,8], index: 0, kind: input, shape index: {}]   ;;  %s1932_s1 = inlined_call_operand.vmem [shape: bf16[2,4,8,8], index: 1, kind: input, shape index: {}]   ;;  %s1933_s2 = inlined_call_operand.vmem [shape: bf16[2,4,8,8], index: 2, kind: input, shape index: {}]   ;;  %s1934_s3 = inlined_call_operand.vmem [shape: f32[2,4,8,8], index: 3, kind: output, shape index: {}]  }
   0x1   :  { %s1742_s14 = smov 0  }
   0x2 LB: > { %s32_s15 = sadd.s32 1, %s1708_s13  ;;  %p1541_p0 = scmp.ge.s32.totalorder %s1712_s14, 1  ;;  %s1712_s14 = sphi %s1742_s14, %s13_s14   ;;  %s1708_s13 = sphi %s1740_s13, %s1936_s13   ;;  %s1704_s12 = sphi %s1738_s12, %s1935_s12  }
   0x3   : > { %p34_p1 = scmp.ge.s32.totalorder %s32_s15, 2  ;;  %p209_p2 = scmp.lt.s32.totalorder %s1712_s14, 3 }
   0x5   : > { %s1938_s15 = smov (%p34_p1, %s32_s15), 0  ;;  %p210_p3 = pnand %p1541_p0, %p209_p2 }
   0x6   : > { %p259_p4 = scmp.lt.s32.totalorder (!%p210_p3), %s1704_s12, 1  ;;  %vm313_vm0 = vcmask (!%p210_p3), 64512   ;;  %v1714_v0 = vmov (!%p210_p3), 0.0   ;;  %vm1715_vm1 = vmmov (!%p210_p3), 0   ;;  %vm304_vm2 = vcmask (!%p210_p3), 7168  }
   0x7   : > { %213 = sbr.rel (%p210_p3) target bundleno = 834 (0x342), region = 32  ;;  %1588 = vmatprep.subr.bf16.mxu0 (!%p210_p3), %v1714_v0  ;;  %314 = vst.msk [vmem:[#allocation4] sm:$0xff] (!%p210_p3), %vm313_vm0, %v1714_v0  ;;  %315 = vst.msk [vmem:[#allocation4 + $0x8] sm:$0xff] (!%p210_p3), %vm313_vm0, %v1714_v0  ;;  %1594 = vmatprep.subr.bf16.mxu1 (!%p210_p3), %v1714_v0  ;;  %v1716_v13 = vmov (!%p210_p3), -inf   ;;  %v1038_v14 = vlaneseq (!%p210_p3)  ;;  %v1717_v41 = vmov (!%p210_p3), 0   ;;  %vm1181_vm4 = vcmask (!%p210_p3), 1043456  }
   0x8   : > { %316 = vst.msk [vmem:[#allocation4 + $0x10] sm:$0xff] (!%p210_p3), %vm313_vm0, %v1714_v0  ;;  %317 = vst.msk [vmem:[#allocation4 + $0x18] sm:$0xff] (!%p210_p3), %vm313_vm0, %v1714_v0  ;;  %1590 = vmatprep.mubr.msk.bf16.mxu0 (!%p210_p3), %vm1715_vm1, %v1714_v0  ;;  %1596 = vmatprep.mubr.msk.bf16.mxu1 (!%p210_p3), %vm1715_vm1, %v1714_v0 }
   0x9   : > { %305 = vst.msk [vmem:[#allocation2] sm:$0xff] (!%p210_p3), %vm304_vm2, %v1716_v13  ;;  %306 = vst.msk [vmem:[#allocation2 + $0x8] sm:$0xff] (!%p210_p3), %vm304_vm2, %v1716_v13  ;;  %v1039_v15 = vshrl.u32 (!%p210_p3), %v1038_v14, 7  ;;  %v1041_v16 = vand.u32 (!%p210_p3), 127, %v1038_v14  ;;  %1664 = vset.pattern.permute.xlu0 (!%p210_p3), %v1717_v41  ;;  %1665 = vset.pattern.permute.xlu1 (!%p210_p3), %v1717_v41 }
   0xa   : > { %307 = vst.msk [vmem:[#allocation2 + $0x10] sm:$0xff] (!%p210_p3), %vm304_vm2, %v1716_v13  ;;  %308 = vst.msk [vmem:[#allocation2 + $0x18] sm:$0xff] (!%p210_p3), %vm304_vm2, %v1716_v13 }
   0xb   : > { %309 = vst.msk [vmem:[#allocation3] sm:$0xff] (!%p210_p3), %vm304_vm2, %v1714_v0  ;;  %310 = vst.msk [vmem:[#allocation3 + $0x8] sm:$0xff] (!%p210_p3), %vm304_vm2, %v1714_v0  ;;  %vm1042_vm3 = vcmp.le.s32.totalorder (!%p210_p3), %v1041_v16, %v1039_v15 }
   0xc   : > { %311 = vst.msk [vmem:[#allocation3 + $0x10] sm:$0xff] (!%p210_p3), %vm304_vm2, %v1714_v0  ;;  %312 = vst.msk [vmem:[#allocation3 + $0x18] sm:$0xff] (!%p210_p3), %vm304_vm2, %v1714_v0 }
   0xe   : > { %s1940_s12 = smov (!%p259_p4, %s1704_s12), 1 }
   0xf   : > { %s1773_s16 = sshll.u32 %s1940_s12, 4  ;;  %s1571_s26 = sshll.u32 %s1940_s12, 5 }
  0x10   : > { %s276_s19 = scalar_lea.vmem %s1932_s1, %s1773_s16  ;;  %s266_s22 = scalar_lea.vmem %s1931_s0, %s1773_s16  ;;  %v1835_v42 = vld [vmem:[#allocation2] sm:$0xff]  ;;  %v1840_v45 = vld [vmem:[#allocation2 + $0x8] sm:$0xff] }
  0x11   : > { %v849_v1 = vld [vmem:[%s276_s19] sm:$0xf]  ;;  %v850_v2 = vld [vmem:[%s276_s19 + $0x4] sm:$0xf]  ;;  %v851_v5 = vld [vmem:[%s276_s19 + $0x8] sm:$0xf]  ;;  %s288_s25 = scalar_lea.vmem %s1933_s2, %s1773_s16  ;;  %s298_s29 = scalar_lea.vmem %s1934_s3, %s1571_s26 }
  0x12   : > { %v858_v3 = vsel %vm313_vm0, %v849_v1, 0  ;;  %v904_v4 = vsel %vm313_vm0, %v850_v2, 0  ;;  %v852_v6 = vld [vmem:[%s276_s19 + $0xc] sm:$0xf]  ;;  %v845_v7 = vld [vmem:[%s266_s22] sm:$0xf] }
  0x13   : > { %1589 = vmatpush3.bf16.xpose.msra.mxu0 %v858_v3  ;;  %1595 = vmatpush3.bf16.xpose.msra.mxu1 %v904_v4  ;;  %v846_v8 = vld [vmem:[%s266_s22 + $0x4] sm:$0xf]  ;;  %v950_v9 = vsel %vm313_vm0, %v851_v5, 0  ;;  %v996_v10 = vsel %vm313_vm0, %v852_v6, 0  ;;  %v847_v11 = vld [vmem:[%s266_s22 + $0x8] sm:$0xf] }
  0x14   : > { %1600 = vmatprep.subr.bf16.mxu0 %v1714_v0  ;;  %1606 = vmatprep.subr.bf16.mxu1 %v1714_v0  ;;  %v848_v12 = vld [vmem:[%s266_s22 + $0xc] sm:$0xf]  ;;  %v1850_v49 = vld [vmem:[#allocation2 + $0x10] sm:$0xff]  ;;  %v1860_v53 = vld [vmem:[#allocation2 + $0x18] sm:$0xff] }
  0x15   : > { %v1174_v58 = vld [vmem:[%s288_s25] sm:$0xf]  ;;  %v1175_v60 = vld [vmem:[%s288_s25 + $0x4] sm:$0xf]  ;;  %v1176_v62 = vld [vmem:[%s288_s25 + $0x8] sm:$0xf] }
  0x16   : > { %v1183_v59 = vsel %vm1181_vm4, %v1174_v58, 0  ;;  %v1229_v61 = vsel %vm1181_vm4, %v1175_v60, 0  ;;  %v1275_v63 = vsel %vm1181_vm4, %v1176_v62, 0  ;;  %v1177_v1 = vld [vmem:[%s288_s25 + $0xc] sm:$0xf]  ;;  %v1115_v41 = vld [vmem:[#allocation3 + $0x10] sm:$0xff] }
  0x17   : > { %v1321_v2 = vsel %vm1181_vm4, %v1177_v1, 0  ;;  %v1142_v58 = vld [vmem:[#allocation4] sm:$0xff] }
  0x1a   : > { %1591 = vmatmul.mubr.msk.bf16.vlgmr.msra.gmra.mrb[0].mxu0 %vm313_vm0, %v845_v7  ;;  %1597 = vmatmul.mubr.msk.bf16.vlgmr.msra.gmra.mrb[0].mxu1 %vm313_vm0, %v846_v8 }
  0x1b   : > { %1601 = vmatpush3.bf16.xpose.msra.mxu0 %v950_v9  ;;  %1607 = vmatpush3.bf16.xpose.msra.mxu1 %v996_v10 }
  0x1c   : > { %1602 = vmatprep.mubr.msk.bf16.mxu0 %vm1715_vm1, %v1714_v0  ;;  %1608 = vmatprep.mubr.msk.bf16.mxu1 %vm1715_vm1, %v1714_v0 }
  0x1d   : > { %1612 = vmatprep.subr.bf16.mxu0 %v1714_v0  ;;  %1618 = vmatprep.subr.bf16.mxu1 %v1714_v0 }
  0x22   : > { %1603 = vmatmul.mubr.msk.bf16.vlgmr.msra.gmra.mrb[4].mxu0 %vm313_vm0, %v847_v11  ;;  %1609 = vmatmul.mubr.msk.bf16.vlgmr.msra.gmra.mrb[4].mxu1 %vm313_vm0, %v848_v12 }
  0x23   : > { %1614 = vmatprep.mubr.msk.bf16.mxu0 %vm1715_vm1, %v1714_v0  ;;  %1620 = vmatprep.mubr.msk.bf16.mxu1 %vm1715_vm1, %v1714_v0 }
  0x24   : > { %1613 = vmatpush3.bf16.msra.mxu0 %v1183_v59  ;;  %1619 = vmatpush3.bf16.msra.mxu1 %v1229_v61  ;;  %v1143_v61 = vld [vmem:[#allocation4 + $0x8] sm:$0xff] }
  0x25   : > { %1624 = vmatprep.subr.bf16.mxu0 %v1714_v0  ;;  %1630 = vmatprep.subr.bf16.mxu1 %v1714_v0 }
  0xed   : > { %v894_v17 = vpop.f32.mrb[0].mxu0  ;;  %v940_v18 = vpop.f32.mrb[0].mxu1 }
  0xee   : > { %v1816_v19 = vsel %vm1042_vm3, %v894_v17, -1e+30  ;;  %v1592_v20 = vpop.f32.mrb[1].mxu0  ;;  %v1819_v21 = vsel %vm1042_vm3, %v940_v18, -1e+30  ;;  %v1598_v22 = vpop.f32.mrb[1].mxu1 }
  0xef   : > { %v897_v23 = vpop.f32.mrb[2].mxu0  ;;  %v1053_v24 = vsel %vm313_vm0, %v1816_v19, -inf  ;;  %v943_v25 = vpop.f32.mrb[2].mxu1  ;;  %v1056_v28 = vsel %vm313_vm0, %v1819_v21, -inf }
  0xf0   : > { %1054 = vmax.xlane.f32.xlu0 %v1053_v24  ;;  %v1593_v26 = vpop.f32.mrb[3].mxu0  ;;  %v1599_v27 = vpop.f32.mrb[3].mxu1 }
  0xf4   : > { %1057 = vmax.xlane.f32.xlu0 %v1056_v28 }
  0xf5   : > { %v986_v29 = vpop.f32.mrb[4].mxu0  ;;  %v1032_v30 = vpop.f32.mrb[4].mxu1 }
  0xf6   : > { %v1826_v31 = vsel %vm1042_vm3, %v986_v29, -1e+30  ;;  %v1604_v32 = vpop.f32.mrb[5].mxu0  ;;  %v1829_v33 = vsel %vm1042_vm3, %v1032_v30, -1e+30  ;;  %v1610_v34 = vpop.f32.mrb[5].mxu1 }
  0xf7   : > { %v989_v35 = vpop.f32.mrb[6].mxu0  ;;  %v1059_v36 = vsel %vm313_vm0, %v1826_v31, -inf  ;;  %v1035_v37 = vpop.f32.mrb[6].mxu1  ;;  %v1062_v40 = vsel %vm313_vm0, %v1829_v33, -inf  ;;  %v1113_v34 = vld [vmem:[#allocation3] sm:$0xff] }
  0xf8   : > { %1060 = vmax.xlane.f32.xlu1 %v1059_v36  ;;  %v1605_v38 = vpop.f32.mrb[7].mxu0  ;;  %v1611_v39 = vpop.f32.mrb[7].mxu1  ;;  %v1114_v37 = vld [vmem:[#allocation3 + $0x8] sm:$0xff] }
  0xfc   : > { %1063 = vmax.xlane.f32.xlu1 %v1062_v40 }
 0x17d   : > { %v1055_v43 = vpop.xlane.xlu0 %1054 }
 0x17e   : > { %v1838_v44 = vmax.f32 %v1835_v42, %v1055_v43 }
 0x180   : > { %v1069_v46 = vsub.f32 %v1835_v42, %v1838_v44  ;;  %1371 = vst.msk [vmem:[#allocation2] sm:$0xff] %vm304_vm2, %v1838_v44  ;;  %1083 = vperm.xlu0 %1664, %v1838_v44  }
 0x181   : > { %v1058_v47 = vpop.xlane.xlu0 %1057 }
 0x182   : > { %v1848_v48 = vmax.f32 %v1840_v45, %v1058_v47 }
 0x184   : > { %v1070_v50 = vsub.f32 %v1840_v45, %v1848_v48  ;;  %1372 = vst.msk [vmem:[#allocation2 + $0x8] sm:$0xff] %vm304_vm2, %v1848_v48  ;;  %1088 = vperm.xlu1 %1665, %v1848_v48   ;;  %v1116_v45 = vld [vmem:[#allocation3 + $0x18] sm:$0xff] }
 0x185   : > { %v1061_v51 = vpop.xlane.xlu1 %1060 }
 0x186   : > { %v1858_v52 = vmax.f32 %v1850_v49, %v1061_v51  ;;  %v1075_v25 = vmul.f32 1.442695, %v1070_v50 }
 0x188   : > { %v1071_v54 = vsub.f32 %v1850_v49, %v1858_v52  ;;  %1373 = vst.msk [vmem:[#allocation2 + $0x10] sm:$0xff] %vm304_vm2, %v1858_v52  ;;  %1093 = vperm.xlu1 %1665, %v1858_v52  }
 0x189   : > { %v1064_v55 = vpop.xlane.xlu1 %1063 }
 0x18a   : > { %v1868_v56 = vmax.f32 %v1860_v53, %v1064_v55  ;;  %v1077_v28 = vmul.f32 1.442695, %v1071_v54 }
 0x18c   : > { %v1072_v57 = vsub.f32 %v1860_v53, %v1868_v56  ;;  %1374 = vst.msk [vmem:[#allocation2 + $0x18] sm:$0xff] %vm304_vm2, %v1868_v56  ;;  %1098 = vperm.xlu1 %1665, %v1868_v56  }
 0x18e   : > { %v1079_v29 = vmul.f32 1.442695, %v1072_v57 }
 0x1ff   : > { %v1084_v3 = vpop.permute.xlu0 %1083 }
 0x200   : > { %v1101_v4 = vsub.f32 %v1816_v19, %v1084_v3 }
 0x202   : > { %v1105_v5 = vmul.f32 1.442695, %v1101_v4 }
 0x203   : > { %v1089_v6 = vpop.permute.xlu1 %1088 }
 0x204   : > { %1666 = vpow2.f32 %v1105_v5  ;;  %v1102_v7 = vsub.f32 %v1819_v21, %v1089_v6 }
 0x206   : > { %v1107_v8 = vmul.f32 1.442695, %v1102_v7  ;;  %v1144_v7 = vld [vmem:[#allocation4 + $0x10] sm:$0xff] }
 0x207   : > { %v1094_v9 = vpop.permute.xlu1 %1093 }
 0x208   : > { %1668 = vpow2.f32 %v1107_v8  ;;  %v1103_v10 = vsub.f32 %v1826_v31, %v1094_v9 }
 0x20a   : > { %v1109_v11 = vmul.f32 1.442695, %v1103_v10 }
 0x20b   : > { %v1099_v12 = vpop.permute.xlu1 %1098 }
 0x20c   : > { %1670 = vpow2.f32 %v1109_v11  ;;  %v1104_v13 = vsub.f32 %v1829_v33, %v1099_v12 }
 0x20e   : > { %v1667_v14 = vpop.eup %1666  ;;  %v1111_v15 = vmul.f32 1.442695, %v1104_v13 }
 0x20f   : > { %v1121_v16 = vsel %vm313_vm0, %v1667_v14, 0.0  ;;  %v1170_v17 = vpack.c.bf16 %v1667_v14, %v1667_v14  ;;  %v1145_v14 = vld [vmem:[#allocation4 + $0x18] sm:$0xff] }
 0x210   : > { %1672 = vpow2.f32 %v1111_v15  ;;  %1122 = vadd.xlane.f32.xlu1 %v1121_v16 }
 0x211   : > { %1615 = vmatmul.mubr.msk.bf16.vlgmr.msra.gmra.mrb[8].mxu0 %vm313_vm0, %v1170_v17  ;;  %1674 = vpow2.f32 %v1075_v25 }
 0x212   : > { %v1669_v18 = vpop.eup %1668  ;;  %1625 = vmatpush3.bf16.msra.mxu0 %v1275_v63  ;;  %1626 = vmatprep.mubr.msk.bf16.mxu0 %vm1715_vm1, %v1714_v0 }
 0x213   : > { %v1124_v19 = vsel %vm313_vm0, %v1669_v18, 0.0  ;;  %v1171_v20 = vpack.c.bf16 %v1669_v18, %v1669_v18 }
 0x214   : > { %1125 = vadd.xlane.f32.xlu0 %v1124_v19 }
 0x215   : > { %1621 = vmatmul.mubr.msk.bf16.vlgmr.msra.gmra.mrb[8].mxu1 %vm313_vm0, %v1171_v20 }
 0x216   : > { %v1671_v21 = vpop.eup %1670  ;;  %1631 = vmatpush3.bf16.msra.mxu1 %v1321_v2  ;;  %1632 = vmatprep.mubr.msk.bf16.mxu1 %vm1715_vm1, %v1714_v0  ;;  %v1073_v0 = vmul.f32 1.442695, %v1069_v46 }
 0x217   : > { %v1127_v22 = vsel %vm313_vm0, %v1671_v21, 0.0  ;;  %v1172_v23 = vpack.c.bf16 %v1671_v21, %v1671_v21 }
 0x218   : > { %1128 = vadd.xlane.f32.xlu1 %v1127_v22  ;;  %1676 = vpow2.f32 %v1073_v0 }
 0x219   : > { %1627 = vmatmul.mubr.msk.bf16.vlgmr.msra.gmra.mrb[12].mxu0 %vm313_vm0, %v1172_v23  ;;  %1678 = vpow2.f32 %v1077_v28 }
 0x21a   : > { %v1673_v24 = vpop.eup %1672  ;;  %1680 = vpow2.f32 %v1079_v29 }
 0x21b   : > { %v1130_v26 = vsel %vm313_vm0, %v1673_v24, 0.0  ;;  %v1173_v27 = vpack.c.bf16 %v1673_v24, %v1673_v24  ;;  %v1675_v30 = vpop.eup %1674 }
 0x21c   : > { %1131 = vadd.xlane.f32.xlu1 %v1130_v26  ;;  %v1118_v39 = vmul.f32 %v1675_v30, %v1114_v37 }
 0x21d   : > { %1633 = vmatmul.mubr.msk.bf16.vlgmr.msra.gmra.mrb[12].mxu1 %vm313_vm0, %v1173_v27 }
 0x222   : > { %v1677_v31 = vpop.eup %1676 }
 0x223   : > { %v1679_v32 = vpop.eup %1678  ;;  %v1117_v35 = vmul.f32 %v1677_v31, %v1113_v34 }
 0x224   : > { %v1681_v33 = vpop.eup %1680  ;;  %v1119_v43 = vmul.f32 %v1679_v32, %v1115_v41 }
 0x225   : > { %v1120_v48 = vmul.f32 %v1681_v33, %v1116_v45 }
 0x22a   : > { %1153 = vperm.xlu0 %1664, %v1675_v30  }
 0x22d   : > { %1148 = vperm.xlu1 %1665, %v1677_v31  }
 0x231   : > { %1158 = vperm.xlu1 %1665, %v1679_v32  }
 0x235   : > { %1163 = vperm.xlu1 %1665, %v1681_v33  }
 0x29d   : > { %v1123_v36 = vpop.xlane.xlu1 %1122 }
 0x29e   : > { %v1133_v38 = vadd.f32 %v1123_v36, %v1117_v35 }
 0x2a0   : > { %1138 = vst.msk [vmem:[#allocation3] sm:$0xff] %vm304_vm2, %v1133_v38 }
 0x2a1   : > { %v1126_v40 = vpop.xlane.xlu0 %1125 }
 0x2a2   : > { %v1134_v42 = vadd.f32 %v1126_v40, %v1118_v39 }
 0x2a4   : > { %1139 = vst.msk [vmem:[#allocation3 + $0x8] sm:$0xff] %vm304_vm2, %v1134_v42 }
 0x2a5   : > { %v1129_v44 = vpop.xlane.xlu1 %1128 }
 0x2a6   : > { %v1135_v46 = vadd.f32 %v1129_v44, %v1119_v43 }
 0x2a7   : > { %v1379_v47 = vld [vmem:[#allocation3] sm:$0xff] }
 0x2a8   : > { %1140 = vst.msk [vmem:[#allocation3 + $0x10] sm:$0xff] %vm304_vm2, %v1135_v46  ;;  %1682 = vrcp.f32 %v1379_v47 }
 0x2a9   : > { %v1132_v49 = vpop.xlane.xlu1 %1131  ;;  %v1154_v62 = vpop.permute.xlu0 %1153 }
 0x2aa   : > { %v1136_v50 = vadd.f32 %v1132_v49, %v1120_v48  ;;  %v1167_v5 = vmul.f32 %v1154_v62, %v1143_v61 }
 0x2ab   : > { %v1380_v51 = vld [vmem:[#allocation3 + $0x8] sm:$0xff] }
 0x2ac   : > { %1141 = vst.msk [vmem:[#allocation3 + $0x18] sm:$0xff] %vm304_vm2, %v1136_v50  ;;  %1684 = vrcp.f32 %v1380_v51 }
 0x2ad   : > { %v1149_v59 = vpop.permute.xlu1 %1148 }
 0x2ae   : > { %v1166_v60 = vmul.f32 %v1149_v59, %v1142_v58 }
 0x2af   : > { %v1381_v52 = vld [vmem:[#allocation3 + $0x10] sm:$0xff] }
 0x2b0   : > { %1686 = vrcp.f32 %v1381_v52 }
 0x2b1   : > { %v1159_v3 = vpop.permute.xlu1 %1158 }
 0x2b2   : > { %v1683_v53 = vpop.eup %1682  ;;  %v1168_v12 = vmul.f32 %v1159_v3, %v1144_v7 }
 0x2b3   : > { %1389 = vperm.xlu1 %1665, %v1683_v53   ;;  %v1382_v54 = vld [vmem:[#allocation3 + $0x18] sm:$0xff] }
 0x2b4   : > { %1688 = vrcp.f32 %v1382_v54 }
 0x2b5   : > { %v1164_v15 = vpop.permute.xlu1 %1163 }
 0x2b6   : > { %v1685_v55 = vpop.eup %1684  ;;  %v1169_v20 = vmul.f32 %v1164_v15, %v1145_v14 }
 0x2b7   : > { %1394 = vperm.xlu0 %1664, %v1685_v55  }
 0x2ba   : > { %v1687_v56 = vpop.eup %1686 }
 0x2bb   : > { %1399 = vperm.xlu1 %1665, %v1687_v56  }
 0x2be   : > { %v1689_v57 = vpop.eup %1688 }
 0x2bf   : > { %1404 = vperm.xlu0 %1664, %v1689_v57  }
 0x2e4   : > { %v1219_v63 = vpop.f32.mrb[8].mxu0 }
 0x2e5   : > { %v1363_v1 = vadd.f32 %v1219_v63, %v1166_v60  ;;  %v1616_v2 = vpop.f32.mrb[9].mxu0 }
 0x2e6   : > { %v1222_v4 = vpop.f32.mrb[10].mxu0 }
 0x2e7   : > { %1367 = vst.msk [vmem:[#allocation4] sm:$0xff] %vm313_vm0, %v1363_v1  ;;  %v1617_v6 = vpop.f32.mrb[11].mxu0 }
 0x2e8   : > { %v1265_v8 = vpop.f32.mrb[8].mxu1 }
 0x2e9   : > { %v1364_v9 = vadd.f32 %v1265_v8, %v1167_v5  ;;  %v1622_v10 = vpop.f32.mrb[9].mxu1 }
 0x2ea   : > { %v1268_v11 = vpop.f32.mrb[10].mxu1 }
 0x2eb   : > { %1368 = vst.msk [vmem:[#allocation4 + $0x8] sm:$0xff] %vm313_vm0, %v1364_v9  ;;  %v1623_v13 = vpop.f32.mrb[11].mxu1 }
 0x2ec   : > { %v1311_v16 = vpop.f32.mrb[12].mxu0 }
 0x2ed   : > { %v1365_v17 = vadd.f32 %v1311_v16, %v1168_v12  ;;  %v1628_v18 = vpop.f32.mrb[13].mxu0 }
 0x2ee   : > { %v1314_v19 = vpop.f32.mrb[14].mxu0  ;;  %v1375_v0 = vld [vmem:[#allocation4] sm:$0xff] }
 0x2ef   : > { %1369 = vst.msk [vmem:[#allocation4 + $0x10] sm:$0xff] %vm313_vm0, %v1365_v17  ;;  %v1629_v21 = vpop.f32.mrb[15].mxu0 }
 0x2f0   : > { %v1357_v22 = vpop.f32.mrb[12].mxu1 }
 0x2f1   : > { %v1366_v23 = vadd.f32 %v1357_v22, %v1169_v20  ;;  %v1634_v24 = vpop.f32.mrb[13].mxu1 }
 0x2f2   : > { %v1360_v25 = vpop.f32.mrb[14].mxu1  ;;  %v1376_v29 = vld [vmem:[#allocation4 + $0x8] sm:$0xff] }
 0x2f3   : > { %1370 = vst.msk [vmem:[#allocation4 + $0x18] sm:$0xff] %vm313_vm0, %v1366_v23  ;;  %v1635_v26 = vpop.f32.mrb[15].mxu1 }
 0x2f6   : > { %v1377_v33 = vld [vmem:[#allocation4 + $0x10] sm:$0xff] }
 0x2fa   : > { %v1378_v36 = vld [vmem:[#allocation4 + $0x18] sm:$0xff] }
 0x332   : > { %v1390_v27 = vpop.permute.xlu1 %1389 }
 0x333   : > { %v1407_v28 = vmul.f32 %v1390_v27, %v1375_v0 }
 0x335   : > { %1411 = vst.msk [vmem:[%s298_s29] sm:$0xff] %vm313_vm0, %v1407_v28 }
 0x336   : > { %v1395_v30 = vpop.permute.xlu0 %1394 }
 0x337   : > { %v1408_v31 = vmul.f32 %v1395_v30, %v1376_v29 }
 0x339   : > { %1412 = vst.msk [vmem:[%s298_s29 + $0x8] sm:$0xff] %vm313_vm0, %v1408_v31 }
 0x33a   : > { %v1400_v32 = vpop.permute.xlu1 %1399 }
 0x33b   : > { %v1409_v34 = vmul.f32 %v1400_v32, %v1377_v33 }
 0x33d   : > { %1413 = vst.msk [vmem:[%s298_s29 + $0x10] sm:$0xff] %vm313_vm0, %v1409_v34 }
 0x33e   : > { %v1405_v35 = vpop.permute.xlu0 %1404 }
 0x33f   : > { %v1410_v37 = vmul.f32 %v1405_v35, %v1378_v36 }
 0x341   : > { %1414 = vst.msk [vmem:[%s298_s29 + $0x18] sm:$0xff] %vm313_vm0, %v1410_v37 }
 0x342 PF: > { %s13_s14 = sadd.s32 1, %s1712_s14   ;;  %s1935_s12 = smov %s1708_s13 }
 0x343   : > { %p10_p5 = scmp.ge.s32.totalorder %s13_s14, 4   ;;  %s1936_s13 = smov %s1938_s15 }
 0x345   :  { %12 = sbr.rel (!%p10_p5) target bundleno = 2 (0x2), region = 80 }

</bundles_post_ra>
